<compile_context>
chip_gen: v5e
topology: v5e:2x2
jax: 0.10.0
libtpu: 0.0.40
codegen_flags: <defaults>
</compile_context>

<pallas_src>
import functools

import jax
import jax.numpy as jnp
import numpy as np
from jax.experimental import pallas as pl
from jax.experimental.pallas import tpu as pltpu

LANE = 128
SUBLANE = 8


def _round_up(n, m):
    return ((n + m - 1) // m) * m


def _pad_axis(a, axis, new_size):
    pad = [(0, 0)] * a.ndim
    pad[axis] = (0, new_size - a.shape[axis])
    return jnp.pad(a, pad)


# ----------------------------------------------------------------------------
# Fused encoder kernel (single pallas_call, grid over batch)
# ----------------------------------------------------------------------------
def _encoder_kernel(*refs, T0, down_t, depth, dilations, halo):
    # ---- unpack refs: inputs, output, then one scratch buffer per resolution
    n_in = 3 + down_t * (2 + 4 * depth) + 2
    in_refs = list(refs[:n_in])
    o_ref = refs[n_in]
    bufs = list(refs[n_in + 1:])          # down_t + 1 zero-haloed VMEM buffers

    it = iter(in_refs)
    x_ref, w0_ref, b0_ref = next(it), next(it), next(it)
    stages = []
    for _ in range(down_t):
        wd_ref, bd_ref = next(it), next(it)
        res = [(next(it), next(it), next(it), next(it)) for _ in range(depth)]
        stages.append((wd_ref, bd_ref, res))
    wo_ref, bo_ref = next(it), next(it)

    f32 = jnp.float32
    bf16 = jnp.bfloat16
    t_sizes = [T0 // (2 ** k) for k in range(down_t + 1)]

    def conv_k3(win_bf, T, d, w_ref, b_ref):
        # win_bf: (T + 2*d, Cin) bf16, halo already included.
        # K separate MXU dots against per-tap weight slabs (no lane concat).
        acc = jnp.dot(win_bf[0:T, :], w_ref[0], preferred_element_type=f32)
        acc = acc + jnp.dot(win_bf[d:d + T, :], w_ref[1],
                            preferred_element_type=f32)
        acc = acc + jnp.dot(win_bf[2 * d:2 * d + T, :], w_ref[2],
                            preferred_element_type=f32)
        return acc + b_ref[...]

    # Zero ONLY the halo rows of each buffer (interiors are fully overwritten
    # before they are read).  Done every grid step so the kernel is correct
    # even when the batch axis is split across TensorCores (per-core scratch).
    for buf, T in zip(bufs, t_sizes):
        zrow = jnp.zeros((halo, buf.shape[-1]), f32)
        buf[pl.ds(0, halo), :] = zrow
        buf[pl.ds(halo + T, halo), :] = zrow

    # ---- Conv1d(Cin, width, 3, 1, 1) + ReLU -> bufs[0] interior -------------
    win0_bf = x_ref[0].astype(bf16)                 # (T0 + 2, Cin), time-padded
    y0 = conv_k3(win0_bf, T0, 1, w0_ref, b0_ref)
    bufs[0][pl.ds(halo, T0), :] = jnp.maximum(y0, 0.0)

    T = T0
    for i in range(down_t):
        wd_ref, bd_ref, res = stages[i]
        T_out = T // 2
        wp = bufs[i].shape[-1]

        # ---- Conv1d(width, width, 4, stride=2, pad=1) -----------------------
        # Two contiguous fold views replace stride-2 sublane gathers:
        #   fold A row t = [x[2t-1], x[2t]]    -> taps 0,1
        #   fold B row t = [x[2t+1], x[2t+2]]  -> taps 2,3
        win = bufs[i][pl.ds(halo - 1, T + 2), :].astype(bf16)   # (T+2, wp)
        fa = win[0:2 * T_out, :].reshape(T_out, 2 * wp)
        fb = win[2:2 + 2 * T_out, :].reshape(T_out, 2 * wp)
        y = jnp.dot(fa, wd_ref[0], preferred_element_type=f32)
        y = y + jnp.dot(fb, wd_ref[1], preferred_element_type=f32)
        bufs[i + 1][pl.ds(halo, T_out), :] = y + bd_ref[...]

        # ---- Resnet1D: depth x ResConv1DBlock (reversed dilations) ----------
        for j, d in enumerate(dilations):
            w1_ref, b1_ref, w2_ref, b2_ref = res[j]
            win = bufs[i + 1][pl.ds(halo - d, T_out + 2 * d), :]
            h = conv_k3(jnp.maximum(win, 0.0).astype(bf16), T_out, d,
                        w1_ref, b1_ref)
            h = jnp.maximum(h, 0.0).astype(bf16)
            h = jnp.dot(h, w2_ref[...], preferred_element_type=f32)
            h = h + b2_ref[...]
            x_in = bufs[i + 1][pl.ds(halo, T_out), :]
            bufs[i + 1][pl.ds(halo, T_out), :] = x_in + h

        T = T_out

    # ---- Conv1d(width, output_emb_width, 3, 1, 1), no activation ------------
    win = bufs[down_t][pl.ds(halo - 1, T + 2), :].astype(bf16)
    o_ref[0, :, :] = conv_k3(win, T, 1, wo_ref, bo_ref)


# ----------------------------------------------------------------------------
# Parameter construction (torch Conv1d layout (Cout, Cin, K)) and one-time
# conversion into the padded / per-tap bf16 layouts the fused kernel consumes.
# ----------------------------------------------------------------------------
def _conv_param(key, c_out, c_in, k):
    kw, kb = jax.random.split(key)
    bound = 1.0 / np.sqrt(c_in * k)
    w = jax.random.uniform(kw, (c_out, c_in, k), jnp.float32, -bound, bound)
    b = jax.random.uniform(kb, (c_out,), jnp.float32, -bound, bound)
    return w, b


def make_encoder_params(key, input_emb_width, output_emb_width, down_t,
                        stride_t, width, depth, dilation_growth_rate):
    assert stride_t == 2, "kernel implements the default stride_t=2 (k=4, pad=1)"
    params = {}
    keys = iter(jax.random.split(key, 128))
    params["conv0"] = _conv_param(next(keys), width, input_emb_width, 3)
    filter_t = stride_t * 2
    for i in range(down_t):
        params[f"down{i}"] = _conv_param(next(keys), width, width, filter_t)
        for j in range(depth):
            params[f"res{i}_{j}_c1"] = _conv_param(next(keys), width, width, 3)
            params[f"res{i}_{j}_c2"] = _conv_param(next(keys), width, width, 1)
    params["conv_out"] = _conv_param(next(keys), output_emb_width, width, 3)
    # Resnet1D default reverse_dilation=True
    dilations = [dilation_growth_rate ** d for d in range(depth)][::-1]
    return params, dilations


def prepare_encoder_params(raw, *, input_emb_width, output_emb_width, width,
                           down_t, depth):
    """Hoisted one-time conversion: pad channel dims to multiples of 128
    (lane-dense), split every conv weight into per-tap (Cin_pad, Cout_pad)
    slabs, build the two tap-pair folds for the stride-2 conv, and cast all
    weights to bf16 (native MXU dtype, halves weight VMEM footprint)."""
    wp = _round_up(width, LANE)
    cop = _round_up(output_emb_width, LANE)
    bf16 = jnp.bfloat16

    def per_tap(w, cin_pad, cout_pad):
        # torch (Cout, Cin, K) -> (K, cin_pad, cout_pad) bf16
        w = jnp.transpose(w, (2, 1, 0))                       # (K, Cin, Cout)
        w = _pad_axis(_pad_axis(w, 1, cin_pad), 2, cout_pad)  # zero pad -> safe
        return w.astype(bf16)

    def bias(b, cout_pad):
        return _pad_axis(b, 0, cout_pad).reshape(1, cout_pad)

    prep = {}
    w, b = raw["conv0"]
    prep["conv0_w"] = per_tap(w, input_emb_width, wp)   # input channels unpadded
    prep["conv0_b"] = bias(b, wp)
    for i in range(down_t):
        w, b = raw[f"down{i}"]                          # (width, width, 4)
        wk = per_tap(w, wp, wp)                         # (4, wp, wp) bf16
        prep[f"down{i}_w"] = jnp.stack(                 # (2, 2*wp, wp): tap folds
            [jnp.concatenate([wk[0], wk[1]], axis=0),
             jnp.concatenate([wk[2], wk[3]], axis=0)])
        prep[f"down{i}_b"] = bias(b, wp)
        for j in range(depth):
            w1, b1 = raw[f"res{i}_{j}_c1"]
            prep[f"res{i}_{j}_w1"] = per_tap(w1, wp, wp)   # (3, wp, wp)
            prep[f"res{i}_{j}_b1"] = bias(b1, wp)
            w2, b2 = raw[f"res{i}_{j}_c2"]                 # (width, width, 1)
            w2 = jnp.transpose(w2[:, :, 0], (1, 0))        # (Cin, Cout)
            prep[f"res{i}_{j}_w2"] = _pad_axis(
                _pad_axis(w2, 0, wp), 1, wp).astype(bf16)
            prep[f"res{i}_{j}_b2"] = bias(b2, wp)
    w, b = raw["conv_out"]
    prep["out_w"] = per_tap(w, wp, cop)                    # (3, wp, cop)
    prep["out_b"] = bias(b, cop)
    return prep


# ----------------------------------------------------------------------------
# Encoder forward (single fused Pallas kernel, batch = parallel grid axis)
# ----------------------------------------------------------------------------
def encoder_forward_pallas(x_ncl, prep, *, output_emb_width, down_t, depth,
                           dilations):
    B, cin, T0 = x_ncl.shape
    assert T0 % (2 ** down_t) == 0
    wp = prep["out_w"].shape[1]
    cop = prep["out_w"].shape[2]
    # 8-aligned halo so interior stores/reads start on an (8,128) tile boundary.
    halo = max(_round_up(max(list(dilations) + [1]), SUBLANE), SUBLANE)
    T_final = T0 // (2 ** down_t)

    # Boundary layout: NCL -> NLC + zero time-halo of 1 for conv0.  Input
    # channels stay unpadded (full last dim is a legal block shape).
    x_nlc = jnp.transpose(x_ncl, (0, 2, 1))
    x_pad = jnp.pad(x_nlc, ((0, 0), (1, 1), (0, 0)))       # (B, T0+2, cin)

    def const_spec(a):
        return pl.BlockSpec(tuple(a.shape), lambda b, _n=a.ndim: (0,) * _n)

    args = [x_pad]
    in_specs = [pl.BlockSpec((1, T0 + 2, cin), lambda b: (b, 0, 0))]
    names = ["conv0_w", "conv0_b"]
    for i in range(down_t):
        names += [f"down{i}_w", f"down{i}_b"]
        for j in range(depth):
            names += [f"res{i}_{j}_w1", f"res{i}_{j}_b1",
                      f"res{i}_{j}_w2", f"res{i}_{j}_b2"]
    names += ["out_w", "out_b"]
    for n in names:
        args.append(prep[n])
        in_specs.append(const_spec(prep[n]))   # weights stay VMEM-resident

    # One zero-haloed, lane-dense activation buffer per temporal resolution
    # (single batch element live at a time -> small against v7x's 64 MiB).
    t_sizes = [T0 // (2 ** k) for k in range(down_t + 1)]
    scratch = [pltpu.VMEM((t + 2 * halo, wp), jnp.float32) for t in t_sizes]

    kernel = functools.partial(
        _encoder_kernel, T0=T0, down_t=down_t, depth=depth,
        dilations=tuple(dilations), halo=halo)

    out = pl.pallas_call(
        kernel,
        out_shape=jax.ShapeDtypeStruct((B, T_final, cop), jnp.float32),
        grid=(B,),
        in_specs=in_specs,
        out_specs=pl.BlockSpec((1, T_final, cop), lambda b: (b, 0, 0)),
        scratch_shapes=scratch,
        compiler_params=pltpu.CompilerParams(
            dimension_semantics=("parallel",),
            vmem_limit_bytes=64 * 1024 * 1024),
    )(*args)

    # Kernel output stays lane-dense (Cout padded to 128); drop padding and go
    # back to PyTorch NCL here (tiny tensor).
    return jnp.transpose(out[:, :, :output_emb_width], (0, 2, 1))


# ----------------------------------------------------------------------------
# Pure-JAX reference (torch semantics, NCL layout, f32) for validation
# ----------------------------------------------------------------------------
def _ref_conv1d(x, w, b, stride=1, pad=0, dilation=1):
    y = jax.lax.conv_general_dilated(
        x, w, window_strides=(stride,), padding=[(pad, pad)],
        rhs_dilation=(dilation,), dimension_numbers=("NCH", "OIH", "NCH"))
    return y + b[None, :, None]


def encoder_forward_ref(x, raw, dilations, down_t):
    w, b = raw["conv0"]
    x = jnp.maximum(_ref_conv1d(x, w, b, stride=1, pad=1), 0.0)
    for i in range(down_t):
        w, b = raw[f"down{i}"]
        x = _ref_conv1d(x, w, b, stride=2, pad=1)
        for j, d in enumerate(dilations):
            w1, b1 = raw[f"res{i}_{j}_c1"]
            w2, b2 = raw[f"res{i}_{j}_c2"]
            h = _ref_conv1d(jnp.maximum(x, 0.0), w1, b1, pad=d, dilation=d)
            h = _ref_conv1d(jnp.maximum(h, 0.0), w2, b2)
            x = x + h
    w, b = raw["conv_out"]
    return _ref_conv1d(x, w, b, stride=1, pad=1)


# ----------------------------------------------------------------------------
if __name__ == "__main__":
    # Small config consistent with Encoder.__init__ (defaults shrunk).
    input_emb_width = 3
    output_emb_width = 32
    down_t = 2
    stride_t = 2
    width = 32
    depth = 2
    dilation_growth_rate = 3
    B, T = 2, 16

    key = jax.random.PRNGKey(0)
    k_params, k_x = jax.random.split(key)
    raw, dilations = make_encoder_params(
        k_params, input_emb_width, output_emb_width, down_t, stride_t,
        width, depth, dilation_growth_rate)
    prep = prepare_encoder_params(
        raw, input_emb_width=input_emb_width,
        output_emb_width=output_emb_width, width=width,
        down_t=down_t, depth=depth)

    # Encoder input is the raw motion feature: (B, input_emb_width, T)
    x = jax.random.normal(k_x, (B, input_emb_width, T), jnp.float32)

    fwd = jax.jit(functools.partial(
        encoder_forward_pallas, output_emb_width=output_emb_width,
        down_t=down_t, depth=depth, dilations=dilations))
    out = jax.block_until_ready(fwd(x, prep))

    ref = jax.block_until_ready(encoder_forward_ref(x, raw, dilations, down_t))

    assert out.shape == (B, output_emb_width, T // (2 ** down_t)), out.shape
    # bf16 MXU operands -> looser tolerance than the f32 reference.
    np.testing.assert_allclose(np.asarray(out), np.asarray(ref),
                               rtol=5e-2, atol=5e-2)
    print("KERNEL_OK")
</pallas_src>

<mosaic_0001>
module attributes {stable_mosaic.version = 11 : i64} {
  func.func @_encoder_kernel(%arg0: i32, %arg1: memref<1x18x3xf32, #tpu.memory_space<vmem>>, %arg2: memref<3x3x128xbf16, #tpu.memory_space<vmem>>, %arg3: memref<1x128xf32, #tpu.memory_space<vmem>>, %arg4: memref<2x256x128xbf16, #tpu.memory_space<vmem>>, %arg5: memref<1x128xf32, #tpu.memory_space<vmem>>, %arg6: memref<3x128x128xbf16, #tpu.memory_space<vmem>>, %arg7: memref<1x128xf32, #tpu.memory_space<vmem>>, %arg8: memref<128x128xbf16, #tpu.memory_space<vmem>>, %arg9: memref<1x128xf32, #tpu.memory_space<vmem>>, %arg10: memref<3x128x128xbf16, #tpu.memory_space<vmem>>, %arg11: memref<1x128xf32, #tpu.memory_space<vmem>>, %arg12: memref<128x128xbf16, #tpu.memory_space<vmem>>, %arg13: memref<1x128xf32, #tpu.memory_space<vmem>>, %arg14: memref<2x256x128xbf16, #tpu.memory_space<vmem>>, %arg15: memref<1x128xf32, #tpu.memory_space<vmem>>, %arg16: memref<3x128x128xbf16, #tpu.memory_space<vmem>>, %arg17: memref<1x128xf32, #tpu.memory_space<vmem>>, %arg18: memref<128x128xbf16, #tpu.memory_space<vmem>>, %arg19: memref<1x128xf32, #tpu.memory_space<vmem>>, %arg20: memref<3x128x128xbf16, #tpu.memory_space<vmem>>, %arg21: memref<1x128xf32, #tpu.memory_space<vmem>>, %arg22: memref<128x128xbf16, #tpu.memory_space<vmem>>, %arg23: memref<1x128xf32, #tpu.memory_space<vmem>>, %arg24: memref<3x128x128xbf16, #tpu.memory_space<vmem>>, %arg25: memref<1x128xf32, #tpu.memory_space<vmem>>, %arg26: memref<1x4x128xf32, #tpu.memory_space<vmem>>, %arg27: memref<32x128xf32, #tpu.memory_space<vmem>>, %arg28: memref<24x128xf32, #tpu.memory_space<vmem>>, %arg29: memref<20x128xf32, #tpu.memory_space<vmem>>) attributes {dimension_semantics = [#tpu.dimension_semantics<parallel>], iteration_bounds = array<i64: 2>, scalar_prefetch = 0 : i64, scratch_operands = 3 : i64, tpu.core_type = #tpu.core_type<tc>, window_params = [{transform_indices = @transform_0, window_bounds = array<i64: 1, 18, 3>}, {pipeline_mode = #tpu.pipeline_mode<synchronous>, transform_indices = @transform_1, window_bounds = array<i64: 3, 3, 128>}, {pipeline_mode = #tpu.pipeline_mode<synchronous>, transform_indices = @transform_2, window_bounds = array<i64: 1, 128>}, {pipeline_mode = #tpu.pipeline_mode<synchronous>, transform_indices = @transform_3, window_bounds = array<i64: 2, 256, 128>}, {pipeline_mode = #tpu.pipeline_mode<synchronous>, transform_indices = @transform_4, window_bounds = array<i64: 1, 128>}, {pipeline_mode = #tpu.pipeline_mode<synchronous>, transform_indices = @transform_5, window_bounds = array<i64: 3, 128, 128>}, {pipeline_mode = #tpu.pipeline_mode<synchronous>, transform_indices = @transform_6, window_bounds = array<i64: 1, 128>}, {pipeline_mode = #tpu.pipeline_mode<synchronous>, transform_indices = @transform_7, window_bounds = array<i64: 128, 128>}, {pipeline_mode = #tpu.pipeline_mode<synchronous>, transform_indices = @transform_8, window_bounds = array<i64: 1, 128>}, {pipeline_mode = #tpu.pipeline_mode<synchronous>, transform_indices = @transform_9, window_bounds = array<i64: 3, 128, 128>}, {pipeline_mode = #tpu.pipeline_mode<synchronous>, transform_indices = @transform_10, window_bounds = array<i64: 1, 128>}, {pipeline_mode = #tpu.pipeline_mode<synchronous>, transform_indices = @transform_11, window_bounds = array<i64: 128, 128>}, {pipeline_mode = #tpu.pipeline_mode<synchronous>, transform_indices = @transform_12, window_bounds = array<i64: 1, 128>}, {pipeline_mode = #tpu.pipeline_mode<synchronous>, transform_indices = @transform_13, window_bounds = array<i64: 2, 256, 128>}, {pipeline_mode = #tpu.pipeline_mode<synchronous>, transform_indices = @transform_14, window_bounds = array<i64: 1, 128>}, {pipeline_mode = #tpu.pipeline_mode<synchronous>, transform_indices = @transform_15, window_bounds = array<i64: 3, 128, 128>}, {pipeline_mode = #tpu.pipeline_mode<synchronous>, transform_indices = @transform_16, window_bounds = array<i64: 1, 128>}, {pipeline_mode = #tpu.pipeline_mode<synchronous>, transform_indices = @transform_17, window_bounds = array<i64: 128, 128>}, {pipeline_mode = #tpu.pipeline_mode<synchronous>, transform_indices = @transform_18, window_bounds = array<i64: 1, 128>}, {pipeline_mode = #tpu.pipeline_mode<synchronous>, transform_indices = @transform_19, window_bounds = array<i64: 3, 128, 128>}, {pipeline_mode = #tpu.pipeline_mode<synchronous>, transform_indices = @transform_20, window_bounds = array<i64: 1, 128>}, {pipeline_mode = #tpu.pipeline_mode<synchronous>, transform_indices = @transform_21, window_bounds = array<i64: 128, 128>}, {pipeline_mode = #tpu.pipeline_mode<synchronous>, transform_indices = @transform_22, window_bounds = array<i64: 1, 128>}, {pipeline_mode = #tpu.pipeline_mode<synchronous>, transform_indices = @transform_23, window_bounds = array<i64: 3, 128, 128>}, {pipeline_mode = #tpu.pipeline_mode<synchronous>, transform_indices = @transform_24, window_bounds = array<i64: 1, 128>}, {transform_indices = @transform_25, window_bounds = array<i64: 1, 4, 128>}]} {
    %cst = arith.constant 0.000000e+00 : f32
    %0 = vector.broadcast %cst : f32 to vector<8x128xf32>
    %c0 = arith.constant 0 : index
    %c0_0 = arith.constant 0 : index
    %1 = vector.load %arg27[%c0, %c0_0] : memref<32x128xf32, #tpu.memory_space<vmem>>, vector<8x128xf32>
    tpu.vector_store %arg27[%c0, %c0_0], %0 {strides = array<i32>} : memref<32x128xf32, #tpu.memory_space<vmem>>, vector<8x128xf32>,
    %c24 = arith.constant 24 : index
    %c0_1 = arith.constant 0 : index
    %2 = vector.load %arg27[%c24, %c0_1] : memref<32x128xf32, #tpu.memory_space<vmem>>, vector<8x128xf32>
    tpu.vector_store %arg27[%c24, %c0_1], %0 {strides = array<i32>} : memref<32x128xf32, #tpu.memory_space<vmem>>, vector<8x128xf32>,
    %cst_2 = arith.constant 0.000000e+00 : f32
    %3 = vector.broadcast %cst_2 : f32 to vector<8x128xf32>
    %c0_3 = arith.constant 0 : index
    %c0_4 = arith.constant 0 : index
    %4 = vector.load %arg28[%c0_3, %c0_4] : memref<24x128xf32, #tpu.memory_space<vmem>>, vector<8x128xf32>
    tpu.vector_store %arg28[%c0_3, %c0_4], %3 {strides = array<i32>} : memref<24x128xf32, #tpu.memory_space<vmem>>, vector<8x128xf32>,
    %c16 = arith.constant 16 : index
    %c0_5 = arith.constant 0 : index
    %5 = vector.load %arg28[%c16, %c0_5] : memref<24x128xf32, #tpu.memory_space<vmem>>, vector<8x128xf32>
    tpu.vector_store %arg28[%c16, %c0_5], %3 {strides = array<i32>} : memref<24x128xf32, #tpu.memory_space<vmem>>, vector<8x128xf32>,
    %cst_6 = arith.constant 0.000000e+00 : f32
    %6 = vector.broadcast %cst_6 : f32 to vector<8x128xf32>
    %c0_7 = arith.constant 0 : index
    %c0_8 = arith.constant 0 : index
    %7 = vector.load %arg29[%c0_7, %c0_8] : memref<20x128xf32, #tpu.memory_space<vmem>>, vector<8x128xf32>
    tpu.vector_store %arg29[%c0_7, %c0_8], %6 {strides = array<i32>} : memref<20x128xf32, #tpu.memory_space<vmem>>, vector<8x128xf32>,
    %c12 = arith.constant 12 : index
    %c0_9 = arith.constant 0 : index
    %8 = vector.load %arg29[%c12, %c0_9] : memref<20x128xf32, #tpu.memory_space<vmem>>, vector<8x128xf32>
    tpu.vector_store %arg29[%c12, %c0_9], %6 {strides = array<i32>} : memref<20x128xf32, #tpu.memory_space<vmem>>, vector<8x128xf32>,
    %c0_10 = arith.constant 0 : index
    %c0_11 = arith.constant 0 : index
    %c0_12 = arith.constant 0 : index
    %9 = vector.load %arg1[%c0_10, %c0_11, %c0_12] : memref<1x18x3xf32, #tpu.memory_space<vmem>>, vector<1x18x3xf32>
    %10 = vector.shape_cast %9 : vector<1x18x3xf32> to vector<18x3xf32>
    %11 = arith.truncf %10 : vector<18x3xf32> to vector<18x3xbf16>
    %12 = vector.extract_strided_slice %11 {offsets = [0, 0], sizes = [16, 3], strides = [1, 1]} : vector<18x3xbf16> to vector<16x3xbf16>
    %c0_13 = arith.constant 0 : index
    %c0_14 = arith.constant 0 : index
    %c0_15 = arith.constant 0 : index
    %13 = vector.load %arg2[%c0_13, %c0_14, %c0_15] : memref<3x3x128xbf16, #tpu.memory_space<vmem>>, vector<1x3x128xbf16>
    %14 = vector.shape_cast %13 : vector<1x3x128xbf16> to vector<3x128xbf16>
    %cst_16 = arith.constant dense<0.000000e+00> : vector<16x128xf32>
    %15 = tpu.matmul %12, %14, %cst_16 {dimension_numbers = #tpu.dot_dimension_numbers<[1], [0], [0], [1], [0, 0, 1, 1], [], []>} : vector<16x3xbf16>, vector<3x128xbf16>, vector<16x128xf32> -> vector<16x128xf32>
    %16 = vector.extract_strided_slice %11 {offsets = [1, 0], sizes = [16, 3], strides = [1, 1]} : vector<18x3xbf16> to vector<16x3xbf16>
    %c1 = arith.constant 1 : index
    %c0_17 = arith.constant 0 : index
    %c0_18 = arith.constant 0 : index
    %17 = vector.load %arg2[%c1, %c0_17, %c0_18] : memref<3x3x128xbf16, #tpu.memory_space<vmem>>, vector<1x3x128xbf16>
    %18 = vector.shape_cast %17 : vector<1x3x128xbf16> to vector<3x128xbf16>
    %cst_19 = arith.constant dense<0.000000e+00> : vector<16x128xf32>
    %19 = tpu.matmul %16, %18, %cst_19 {dimension_numbers = #tpu.dot_dimension_numbers<[1], [0], [0], [1], [0, 0, 1, 1], [], []>} : vector<16x3xbf16>, vector<3x128xbf16>, vector<16x128xf32> -> vector<16x128xf32>
    %20 = arith.addf %15, %19 : vector<16x128xf32>
    %21 = vector.extract_strided_slice %11 {offsets = [2, 0], sizes = [16, 3], strides = [1, 1]} : vector<18x3xbf16> to vector<16x3xbf16>
    %c2 = arith.constant 2 : index
    %c0_20 = arith.constant 0 : index
    %c0_21 = arith.constant 0 : index
    %22 = vector.load %arg2[%c2, %c0_20, %c0_21] : memref<3x3x128xbf16, #tpu.memory_space<vmem>>, vector<1x3x128xbf16>
    %23 = vector.shape_cast %22 : vector<1x3x128xbf16> to vector<3x128xbf16>
    %cst_22 = arith.constant dense<0.000000e+00> : vector<16x128xf32>
    %24 = tpu.matmul %21, %23, %cst_22 {dimension_numbers = #tpu.dot_dimension_numbers<[1], [0], [0], [1], [0, 0, 1, 1], [], []>} : vector<16x3xbf16>, vector<3x128xbf16>, vector<16x128xf32> -> vector<16x128xf32>
    %25 = arith.addf %20, %24 : vector<16x128xf32>
    %c0_23 = arith.constant 0 : index
    %c0_24 = arith.constant 0 : index
    %26 = vector.load %arg3[%c0_23, %c0_24] : memref<1x128xf32, #tpu.memory_space<vmem>>, vector<1x128xf32>
    %27 = vector.broadcast %26 : vector<1x128xf32> to vector<16x128xf32>
    %28 = arith.addf %25, %27 : vector<16x128xf32>
    %cst_25 = arith.constant 0.000000e+00 : f32
    %29 = vector.broadcast %cst_25 : f32 to vector<16x128xf32>
    %30 = arith.maximumf %28, %29 : vector<16x128xf32>
    %c8 = arith.constant 8 : index
    %c0_26 = arith.constant 0 : index
    %31 = vector.load %arg27[%c8, %c0_26] : memref<32x128xf32, #tpu.memory_space<vmem>>, vector<16x128xf32>
    tpu.vector_store %arg27[%c8, %c0_26], %30 {strides = array<i32>} : memref<32x128xf32, #tpu.memory_space<vmem>>, vector<16x128xf32>,
    %c7 = arith.constant 7 : index
    %c0_27 = arith.constant 0 : index
    %32 = vector.load %arg27[%c7, %c0_27] : memref<32x128xf32, #tpu.memory_space<vmem>>, vector<18x128xf32>
    %33 = arith.truncf %32 : vector<18x128xf32> to vector<18x128xbf16>
    %34 = vector.extract_strided_slice %33 {offsets = [0, 0], sizes = [16, 128], strides = [1, 1]} : vector<18x128xbf16> to vector<16x128xbf16>
    %35 = vector.shape_cast %34 : vector<16x128xbf16> to vector<8x256xbf16>
    %36 = vector.extract_strided_slice %33 {offsets = [2, 0], sizes = [16, 128], strides = [1, 1]} : vector<18x128xbf16> to vector<16x128xbf16>
    %37 = vector.shape_cast %36 : vector<16x128xbf16> to vector<8x256xbf16>
    %c0_28 = arith.constant 0 : index
    %c0_29 = arith.constant 0 : index
    %c0_30 = arith.constant 0 : index
    %38 = vector.load %arg4[%c0_28, %c0_29, %c0_30] : memref<2x256x128xbf16, #tpu.memory_space<vmem>>, vector<1x256x128xbf16>
    %39 = vector.shape_cast %38 : vector<1x256x128xbf16> to vector<256x128xbf16>
    %cst_31 = arith.constant dense<0.000000e+00> : vector<8x128xf32>
    %40 = tpu.matmul %35, %39, %cst_31 {dimension_numbers = #tpu.dot_dimension_numbers<[1], [0], [0], [1], [0, 0, 1, 1], [], []>} : vector<8x256xbf16>, vector<256x128xbf16>, vector<8x128xf32> -> vector<8x128xf32>
    %c1_32 = arith.constant 1 : index
    %c0_33 = arith.constant 0 : index
    %c0_34 = arith.constant 0 : index
    %41 = vector.load %arg4[%c1_32, %c0_33, %c0_34] : memref<2x256x128xbf16, #tpu.memory_space<vmem>>, vector<1x256x128xbf16>
    %42 = vector.shape_cast %41 : vector<1x256x128xbf16> to vector<256x128xbf16>
    %cst_35 = arith.constant dense<0.000000e+00> : vector<8x128xf32>
    %43 = tpu.matmul %37, %42, %cst_35 {dimension_numbers = #tpu.dot_dimension_numbers<[1], [0], [0], [1], [0, 0, 1, 1], [], []>} : vector<8x256xbf16>, vector<256x128xbf16>, vector<8x128xf32> -> vector<8x128xf32>
    %44 = arith.addf %40, %43 : vector<8x128xf32>
    %c0_36 = arith.constant 0 : index
    %c0_37 = arith.constant 0 : index
    %45 = vector.load %arg5[%c0_36, %c0_37] : memref<1x128xf32, #tpu.memory_space<vmem>>, vector<1x128xf32>
    %46 = vector.broadcast %45 : vector<1x128xf32> to vector<8x128xf32>
    %47 = arith.addf %44, %46 : vector<8x128xf32>
    %c8_38 = arith.constant 8 : index
    %c0_39 = arith.constant 0 : index
    %48 = vector.load %arg28[%c8_38, %c0_39] : memref<24x128xf32, #tpu.memory_space<vmem>>, vector<8x128xf32>
    tpu.vector_store %arg28[%c8_38, %c0_39], %47 {strides = array<i32>} : memref<24x128xf32, #tpu.memory_space<vmem>>, vector<8x128xf32>,
    %c5 = arith.constant 5 : index
    %c0_40 = arith.constant 0 : index
    %49 = vector.load %arg28[%c5, %c0_40] : memref<24x128xf32, #tpu.memory_space<vmem>>, vector<14x128xf32>
    %cst_41 = arith.constant 0.000000e+00 : f32
    %50 = vector.broadcast %cst_41 : f32 to vector<14x128xf32>
    %51 = arith.maximumf %49, %50 : vector<14x128xf32>
    %52 = arith.truncf %51 : vector<14x128xf32> to vector<14x128xbf16>
    %53 = vector.extract_strided_slice %52 {offsets = [0, 0], sizes = [8, 128], strides = [1, 1]} : vector<14x128xbf16> to vector<8x128xbf16>
    %c0_42 = arith.constant 0 : index
    %c0_43 = arith.constant 0 : index
    %c0_44 = arith.constant 0 : index
    %54 = vector.load %arg6[%c0_42, %c0_43, %c0_44] : memref<3x128x128xbf16, #tpu.memory_space<vmem>>, vector<1x128x128xbf16>
    %55 = vector.shape_cast %54 : vector<1x128x128xbf16> to vector<128x128xbf16>
    %cst_45 = arith.constant dense<0.000000e+00> : vector<8x128xf32>
    %56 = tpu.matmul %53, %55, %cst_45 {dimension_numbers = #tpu.dot_dimension_numbers<[1], [0], [0], [1], [0, 0, 1, 1], [], []>} : vector<8x128xbf16>, vector<128x128xbf16>, vector<8x128xf32> -> vector<8x128xf32>
    %57 = vector.extract_strided_slice %52 {offsets = [3, 0], sizes = [8, 128], strides = [1, 1]} : vector<14x128xbf16> to vector<8x128xbf16>
    %c1_46 = arith.constant 1 : index
    %c0_47 = arith.constant 0 : index
    %c0_48 = arith.constant 0 : index
    %58 = vector.load %arg6[%c1_46, %c0_47, %c0_48] : memref<3x128x128xbf16, #tpu.memory_space<vmem>>, vector<1x128x128xbf16>
    %59 = vector.shape_cast %58 : vector<1x128x128xbf16> to vector<128x128xbf16>
    %cst_49 = arith.constant dense<0.000000e+00> : vector<8x128xf32>
    %60 = tpu.matmul %57, %59, %cst_49 {dimension_numbers = #tpu.dot_dimension_numbers<[1], [0], [0], [1], [0, 0, 1, 1], [], []>} : vector<8x128xbf16>, vector<128x128xbf16>, vector<8x128xf32> -> vector<8x128xf32>
    %61 = arith.addf %56, %60 : vector<8x128xf32>
    %62 = vector.extract_strided_slice %52 {offsets = [6, 0], sizes = [8, 128], strides = [1, 1]} : vector<14x128xbf16> to vector<8x128xbf16>
    %c2_50 = arith.constant 2 : index
    %c0_51 = arith.constant 0 : index
    %c0_52 = arith.constant 0 : index
    %63 = vector.load %arg6[%c2_50, %c0_51, %c0_52] : memref<3x128x128xbf16, #tpu.memory_space<vmem>>, vector<1x128x128xbf16>
    %64 = vector.shape_cast %63 : vector<1x128x128xbf16> to vector<128x128xbf16>
    %cst_53 = arith.constant dense<0.000000e+00> : vector<8x128xf32>
    %65 = tpu.matmul %62, %64, %cst_53 {dimension_numbers = #tpu.dot_dimension_numbers<[1], [0], [0], [1], [0, 0, 1, 1], [], []>} : vector<8x128xbf16>, vector<128x128xbf16>, vector<8x128xf32> -> vector<8x128xf32>
    %66 = arith.addf %61, %65 : vector<8x128xf32>
    %c0_54 = arith.constant 0 : index
    %c0_55 = arith.constant 0 : index
    %67 = vector.load %arg7[%c0_54, %c0_55] : memref<1x128xf32, #tpu.memory_space<vmem>>, vector<1x128xf32>
    %68 = vector.broadcast %67 : vector<1x128xf32> to vector<8x128xf32>
    %69 = arith.addf %66, %68 : vector<8x128xf32>
    %cst_56 = arith.constant 0.000000e+00 : f32
    %70 = vector.broadcast %cst_56 : f32 to vector<8x128xf32>
    %71 = arith.maximumf %69, %70 : vector<8x128xf32>
    %72 = arith.truncf %71 : vector<8x128xf32> to vector<8x128xbf16>
    %c0_57 = arith.constant 0 : index
    %c0_58 = arith.constant 0 : index
    %73 = vector.load %arg8[%c0_57, %c0_58] : memref<128x128xbf16, #tpu.memory_space<vmem>>, vector<128x128xbf16>
    %cst_59 = arith.constant dense<0.000000e+00> : vector<8x128xf32>
    %74 = tpu.matmul %72, %73, %cst_59 {dimension_numbers = #tpu.dot_dimension_numbers<[1], [0], [0], [1], [0, 0, 1, 1], [], []>} : vector<8x128xbf16>, vector<128x128xbf16>, vector<8x128xf32> -> vector<8x128xf32>
    %c0_60 = arith.constant 0 : index
    %c0_61 = arith.constant 0 : index
    %75 = vector.load %arg9[%c0_60, %c0_61] : memref<1x128xf32, #tpu.memory_space<vmem>>, vector<1x128xf32>
    %76 = vector.broadcast %75 : vector<1x128xf32> to vector<8x128xf32>
    %77 = arith.addf %74, %76 : vector<8x128xf32>
    %c8_62 = arith.constant 8 : index
    %c0_63 = arith.constant 0 : index
    %78 = vector.load %arg28[%c8_62, %c0_63] : memref<24x128xf32, #tpu.memory_space<vmem>>, vector<8x128xf32>
    %79 = arith.addf %78, %77 : vector<8x128xf32>
    %c8_64 = arith.constant 8 : index
    %c0_65 = arith.constant 0 : index
    %80 = vector.load %arg28[%c8_64, %c0_65] : memref<24x128xf32, #tpu.memory_space<vmem>>, vector<8x128xf32>
    tpu.vector_store %arg28[%c8_64, %c0_65], %79 {strides = array<i32>} : memref<24x128xf32, #tpu.memory_space<vmem>>, vector<8x128xf32>,
    %c7_66 = arith.constant 7 : index
    %c0_67 = arith.constant 0 : index
    %81 = vector.load %arg28[%c7_66, %c0_67] : memref<24x128xf32, #tpu.memory_space<vmem>>, vector<10x128xf32>
    %cst_68 = arith.constant 0.000000e+00 : f32
    %82 = vector.broadcast %cst_68 : f32 to vector<10x128xf32>
    %83 = arith.maximumf %81, %82 : vector<10x128xf32>
    %84 = arith.truncf %83 : vector<10x128xf32> to vector<10x128xbf16>
    %85 = vector.extract_strided_slice %84 {offsets = [0, 0], sizes = [8, 128], strides = [1, 1]} : vector<10x128xbf16> to vector<8x128xbf16>
    %c0_69 = arith.constant 0 : index
    %c0_70 = arith.constant 0 : index
    %c0_71 = arith.constant 0 : index
    %86 = vector.load %arg10[%c0_69, %c0_70, %c0_71] : memref<3x128x128xbf16, #tpu.memory_space<vmem>>, vector<1x128x128xbf16>
    %87 = vector.shape_cast %86 : vector<1x128x128xbf16> to vector<128x128xbf16>
    %cst_72 = arith.constant dense<0.000000e+00> : vector<8x128xf32>
    %88 = tpu.matmul %85, %87, %cst_72 {dimension_numbers = #tpu.dot_dimension_numbers<[1], [0], [0], [1], [0, 0, 1, 1], [], []>} : vector<8x128xbf16>, vector<128x128xbf16>, vector<8x128xf32> -> vector<8x128xf32>
    %89 = vector.extract_strided_slice %84 {offsets = [1, 0], sizes = [8, 128], strides = [1, 1]} : vector<10x128xbf16> to vector<8x128xbf16>
    %c1_73 = arith.constant 1 : index
    %c0_74 = arith.constant 0 : index
    %c0_75 = arith.constant 0 : index
    %90 = vector.load %arg10[%c1_73, %c0_74, %c0_75] : memref<3x128x128xbf16, #tpu.memory_space<vmem>>, vector<1x128x128xbf16>
    %91 = vector.shape_cast %90 : vector<1x128x128xbf16> to vector<128x128xbf16>
    %cst_76 = arith.constant dense<0.000000e+00> : vector<8x128xf32>
    %92 = tpu.matmul %89, %91, %cst_76 {dimension_numbers = #tpu.dot_dimension_numbers<[1], [0], [0], [1], [0, 0, 1, 1], [], []>} : vector<8x128xbf16>, vector<128x128xbf16>, vector<8x128xf32> -> vector<8x128xf32>
    %93 = arith.addf %88, %92 : vector<8x128xf32>
    %94 = vector.extract_strided_slice %84 {offsets = [2, 0], sizes = [8, 128], strides = [1, 1]} : vector<10x128xbf16> to vector<8x128xbf16>
    %c2_77 = arith.constant 2 : index
    %c0_78 = arith.constant 0 : index
    %c0_79 = arith.constant 0 : index
    %95 = vector.load %arg10[%c2_77, %c0_78, %c0_79] : memref<3x128x128xbf16, #tpu.memory_space<vmem>>, vector<1x128x128xbf16>
    %96 = vector.shape_cast %95 : vector<1x128x128xbf16> to vector<128x128xbf16>
    %cst_80 = arith.constant dense<0.000000e+00> : vector<8x128xf32>
    %97 = tpu.matmul %94, %96, %cst_80 {dimension_numbers = #tpu.dot_dimension_numbers<[1], [0], [0], [1], [0, 0, 1, 1], [], []>} : vector<8x128xbf16>, vector<128x128xbf16>, vector<8x128xf32> -> vector<8x128xf32>
    %98 = arith.addf %93, %97 : vector<8x128xf32>
    %c0_81 = arith.constant 0 : index
    %c0_82 = arith.constant 0 : index
    %99 = vector.load %arg11[%c0_81, %c0_82] : memref<1x128xf32, #tpu.memory_space<vmem>>, vector<1x128xf32>
    %100 = vector.broadcast %99 : vector<1x128xf32> to vector<8x128xf32>
    %101 = arith.addf %98, %100 : vector<8x128xf32>
    %cst_83 = arith.constant 0.000000e+00 : f32
    %102 = vector.broadcast %cst_83 : f32 to vector<8x128xf32>
    %103 = arith.maximumf %101, %102 : vector<8x128xf32>
    %104 = arith.truncf %103 : vector<8x128xf32> to vector<8x128xbf16>
    %c0_84 = arith.constant 0 : index
    %c0_85 = arith.constant 0 : index
    %105 = vector.load %arg12[%c0_84, %c0_85] : memref<128x128xbf16, #tpu.memory_space<vmem>>, vector<128x128xbf16>
    %cst_86 = arith.constant dense<0.000000e+00> : vector<8x128xf32>
    %106 = tpu.matmul %104, %105, %cst_86 {dimension_numbers = #tpu.dot_dimension_numbers<[1], [0], [0], [1], [0, 0, 1, 1], [], []>} : vector<8x128xbf16>, vector<128x128xbf16>, vector<8x128xf32> -> vector<8x128xf32>
    %c0_87 = arith.constant 0 : index
    %c0_88 = arith.constant 0 : index
    %107 = vector.load %arg13[%c0_87, %c0_88] : memref<1x128xf32, #tpu.memory_space<vmem>>, vector<1x128xf32>
    %108 = vector.broadcast %107 : vector<1x128xf32> to vector<8x128xf32>
    %109 = arith.addf %106, %108 : vector<8x128xf32>
    %c8_89 = arith.constant 8 : index
    %c0_90 = arith.constant 0 : index
    %110 = vector.load %arg28[%c8_89, %c0_90] : memref<24x128xf32, #tpu.memory_space<vmem>>, vector<8x128xf32>
    %111 = arith.addf %110, %109 : vector<8x128xf32>
    %c8_91 = arith.constant 8 : index
    %c0_92 = arith.constant 0 : index
    %112 = vector.load %arg28[%c8_91, %c0_92] : memref<24x128xf32, #tpu.memory_space<vmem>>, vector<8x128xf32>
    tpu.vector_store %arg28[%c8_91, %c0_92], %111 {strides = array<i32>} : memref<24x128xf32, #tpu.memory_space<vmem>>, vector<8x128xf32>,
    %c7_93 = arith.constant 7 : index
    %c0_94 = arith.constant 0 : index
    %113 = vector.load %arg28[%c7_93, %c0_94] : memref<24x128xf32, #tpu.memory_space<vmem>>, vector<10x128xf32>
    %114 = arith.truncf %113 : vector<10x128xf32> to vector<10x128xbf16>
    %115 = vector.extract_strided_slice %114 {offsets = [0, 0], sizes = [8, 128], strides = [1, 1]} : vector<10x128xbf16> to vector<8x128xbf16>
    %116 = vector.shape_cast %115 : vector<8x128xbf16> to vector<4x256xbf16>
    %117 = vector.extract_strided_slice %114 {offsets = [2, 0], sizes = [8, 128], strides = [1, 1]} : vector<10x128xbf16> to vector<8x128xbf16>
    %118 = vector.shape_cast %117 : vector<8x128xbf16> to vector<4x256xbf16>
    %c0_95 = arith.constant 0 : index
    %c0_96 = arith.constant 0 : index
    %c0_97 = arith.constant 0 : index
    %119 = vector.load %arg14[%c0_95, %c0_96, %c0_97] : memref<2x256x128xbf16, #tpu.memory_space<vmem>>, vector<1x256x128xbf16>
    %120 = vector.shape_cast %119 : vector<1x256x128xbf16> to vector<256x128xbf16>
    %cst_98 = arith.constant dense<0.000000e+00> : vector<4x128xf32>
    %121 = tpu.matmul %116, %120, %cst_98 {dimension_numbers = #tpu.dot_dimension_numbers<[1], [0], [0], [1], [0, 0, 1, 1], [], []>} : vector<4x256xbf16>, vector<256x128xbf16>, vector<4x128xf32> -> vector<4x128xf32>
    %c1_99 = arith.constant 1 : index
    %c0_100 = arith.constant 0 : index
    %c0_101 = arith.constant 0 : index
    %122 = vector.load %arg14[%c1_99, %c0_100, %c0_101] : memref<2x256x128xbf16, #tpu.memory_space<vmem>>, vector<1x256x128xbf16>
    %123 = vector.shape_cast %122 : vector<1x256x128xbf16> to vector<256x128xbf16>
    %cst_102 = arith.constant dense<0.000000e+00> : vector<4x128xf32>
    %124 = tpu.matmul %118, %123, %cst_102 {dimension_numbers = #tpu.dot_dimension_numbers<[1], [0], [0], [1], [0, 0, 1, 1], [], []>} : vector<4x256xbf16>, vector<256x128xbf16>, vector<4x128xf32> -> vector<4x128xf32>
    %125 = arith.addf %121, %124 : vector<4x128xf32>
    %c0_103 = arith.constant 0 : index
    %c0_104 = arith.constant 0 : index
    %126 = vector.load %arg15[%c0_103, %c0_104] : memref<1x128xf32, #tpu.memory_space<vmem>>, vector<1x128xf32>
    %127 = vector.broadcast %126 : vector<1x128xf32> to vector<4x128xf32>
    %128 = arith.addf %125, %127 : vector<4x128xf32>
    %c8_105 = arith.constant 8 : index
    %c0_106 = arith.constant 0 : index
    %129 = vector.load %arg29[%c8_105, %c0_106] : memref<20x128xf32, #tpu.memory_space<vmem>>, vector<4x128xf32>
    tpu.vector_store %arg29[%c8_105, %c0_106], %128 {strides = array<i32>} : memref<20x128xf32, #tpu.memory_space<vmem>>, vector<4x128xf32>,
    %c5_107 = arith.constant 5 : index
    %c0_108 = arith.constant 0 : index
    %130 = vector.load %arg29[%c5_107, %c0_108] : memref<20x128xf32, #tpu.memory_space<vmem>>, vector<10x128xf32>
    %cst_109 = arith.constant 0.000000e+00 : f32
    %131 = vector.broadcast %cst_109 : f32 to vector<10x128xf32>
    %132 = arith.maximumf %130, %131 : vector<10x128xf32>
    %133 = arith.truncf %132 : vector<10x128xf32> to vector<10x128xbf16>
    %134 = vector.extract_strided_slice %133 {offsets = [0, 0], sizes = [4, 128], strides = [1, 1]} : vector<10x128xbf16> to vector<4x128xbf16>
    %c0_110 = arith.constant 0 : index
    %c0_111 = arith.constant 0 : index
    %c0_112 = arith.constant 0 : index
    %135 = vector.load %arg16[%c0_110, %c0_111, %c0_112] : memref<3x128x128xbf16, #tpu.memory_space<vmem>>, vector<1x128x128xbf16>
    %136 = vector.shape_cast %135 : vector<1x128x128xbf16> to vector<128x128xbf16>
    %cst_113 = arith.constant dense<0.000000e+00> : vector<4x128xf32>
    %137 = tpu.matmul %134, %136, %cst_113 {dimension_numbers = #tpu.dot_dimension_numbers<[1], [0], [0], [1], [0, 0, 1, 1], [], []>} : vector<4x128xbf16>, vector<128x128xbf16>, vector<4x128xf32> -> vector<4x128xf32>
    %138 = vector.extract_strided_slice %133 {offsets = [3, 0], sizes = [4, 128], strides = [1, 1]} : vector<10x128xbf16> to vector<4x128xbf16>
    %c1_114 = arith.constant 1 : index
    %c0_115 = arith.constant 0 : index
    %c0_116 = arith.constant 0 : index
    %139 = vector.load %arg16[%c1_114, %c0_115, %c0_116] : memref<3x128x128xbf16, #tpu.memory_space<vmem>>, vector<1x128x128xbf16>
    %140 = vector.shape_cast %139 : vector<1x128x128xbf16> to vector<128x128xbf16>
    %cst_117 = arith.constant dense<0.000000e+00> : vector<4x128xf32>
    %141 = tpu.matmul %138, %140, %cst_117 {dimension_numbers = #tpu.dot_dimension_numbers<[1], [0], [0], [1], [0, 0, 1, 1], [], []>} : vector<4x128xbf16>, vector<128x128xbf16>, vector<4x128xf32> -> vector<4x128xf32>
    %142 = arith.addf %137, %141 : vector<4x128xf32>
    %143 = vector.extract_strided_slice %133 {offsets = [6, 0], sizes = [4, 128], strides = [1, 1]} : vector<10x128xbf16> to vector<4x128xbf16>
    %c2_118 = arith.constant 2 : index
    %c0_119 = arith.constant 0 : index
    %c0_120 = arith.constant 0 : index
    %144 = vector.load %arg16[%c2_118, %c0_119, %c0_120] : memref<3x128x128xbf16, #tpu.memory_space<vmem>>, vector<1x128x128xbf16>
    %145 = vector.shape_cast %144 : vector<1x128x128xbf16> to vector<128x128xbf16>
    %cst_121 = arith.constant dense<0.000000e+00> : vector<4x128xf32>
    %146 = tpu.matmul %143, %145, %cst_121 {dimension_numbers = #tpu.dot_dimension_numbers<[1], [0], [0], [1], [0, 0, 1, 1], [], []>} : vector<4x128xbf16>, vector<128x128xbf16>, vector<4x128xf32> -> vector<4x128xf32>
    %147 = arith.addf %142, %146 : vector<4x128xf32>
    %c0_122 = arith.constant 0 : index
    %c0_123 = arith.constant 0 : index
    %148 = vector.load %arg17[%c0_122, %c0_123] : memref<1x128xf32, #tpu.memory_space<vmem>>, vector<1x128xf32>
    %149 = vector.broadcast %148 : vector<1x128xf32> to vector<4x128xf32>
    %150 = arith.addf %147, %149 : vector<4x128xf32>
    %cst_124 = arith.constant 0.000000e+00 : f32
    %151 = vector.broadcast %cst_124 : f32 to vector<4x128xf32>
    %152 = arith.maximumf %150, %151 : vector<4x128xf32>
    %153 = arith.truncf %152 : vector<4x128xf32> to vector<4x128xbf16>
    %c0_125 = arith.constant 0 : index
    %c0_126 = arith.constant 0 : index
    %154 = vector.load %arg18[%c0_125, %c0_126] : memref<128x128xbf16, #tpu.memory_space<vmem>>, vector<128x128xbf16>
    %cst_127 = arith.constant dense<0.000000e+00> : vector<4x128xf32>
    %155 = tpu.matmul %153, %154, %cst_127 {dimension_numbers = #tpu.dot_dimension_numbers<[1], [0], [0], [1], [0, 0, 1, 1], [], []>} : vector<4x128xbf16>, vector<128x128xbf16>, vector<4x128xf32> -> vector<4x128xf32>
    %c0_128 = arith.constant 0 : index
    %c0_129 = arith.constant 0 : index
    %156 = vector.load %arg19[%c0_128, %c0_129] : memref<1x128xf32, #tpu.memory_space<vmem>>, vector<1x128xf32>
    %157 = vector.broadcast %156 : vector<1x128xf32> to vector<4x128xf32>
    %158 = arith.addf %155, %157 : vector<4x128xf32>
    %c8_130 = arith.constant 8 : index
    %c0_131 = arith.constant 0 : index
    %159 = vector.load %arg29[%c8_130, %c0_131] : memref<20x128xf32, #tpu.memory_space<vmem>>, vector<4x128xf32>
    %160 = arith.addf %159, %158 : vector<4x128xf32>
    %c8_132 = arith.constant 8 : index
    %c0_133 = arith.constant 0 : index
    %161 = vector.load %arg29[%c8_132, %c0_133] : memref<20x128xf32, #tpu.memory_space<vmem>>, vector<4x128xf32>
    tpu.vector_store %arg29[%c8_132, %c0_133], %160 {strides = array<i32>} : memref<20x128xf32, #tpu.memory_space<vmem>>, vector<4x128xf32>,
    %c7_134 = arith.constant 7 : index
    %c0_135 = arith.constant 0 : index
    %162 = vector.load %arg29[%c7_134, %c0_135] : memref<20x128xf32, #tpu.memory_space<vmem>>, vector<6x128xf32>
    %cst_136 = arith.constant 0.000000e+00 : f32
    %163 = vector.broadcast %cst_136 : f32 to vector<6x128xf32>
    %164 = arith.maximumf %162, %163 : vector<6x128xf32>
    %165 = arith.truncf %164 : vector<6x128xf32> to vector<6x128xbf16>
    %166 = vector.extract_strided_slice %165 {offsets = [0, 0], sizes = [4, 128], strides = [1, 1]} : vector<6x128xbf16> to vector<4x128xbf16>
    %c0_137 = arith.constant 0 : index
    %c0_138 = arith.constant 0 : index
    %c0_139 = arith.constant 0 : index
    %167 = vector.load %arg20[%c0_137, %c0_138, %c0_139] : memref<3x128x128xbf16, #tpu.memory_space<vmem>>, vector<1x128x128xbf16>
    %168 = vector.shape_cast %167 : vector<1x128x128xbf16> to vector<128x128xbf16>
    %cst_140 = arith.constant dense<0.000000e+00> : vector<4x128xf32>
    %169 = tpu.matmul %166, %168, %cst_140 {dimension_numbers = #tpu.dot_dimension_numbers<[1], [0], [0], [1], [0, 0, 1, 1], [], []>} : vector<4x128xbf16>, vector<128x128xbf16>, vector<4x128xf32> -> vector<4x128xf32>
    %170 = vector.extract_strided_slice %165 {offsets = [1, 0], sizes = [4, 128], strides = [1, 1]} : vector<6x128xbf16> to vector<4x128xbf16>
    %c1_141 = arith.constant 1 : index
    %c0_142 = arith.constant 0 : index
    %c0_143 = arith.constant 0 : index
    %171 = vector.load %arg20[%c1_141, %c0_142, %c0_143] : memref<3x128x128xbf16, #tpu.memory_space<vmem>>, vector<1x128x128xbf16>
    %172 = vector.shape_cast %171 : vector<1x128x128xbf16> to vector<128x128xbf16>
    %cst_144 = arith.constant dense<0.000000e+00> : vector<4x128xf32>
    %173 = tpu.matmul %170, %172, %cst_144 {dimension_numbers = #tpu.dot_dimension_numbers<[1], [0], [0], [1], [0, 0, 1, 1], [], []>} : vector<4x128xbf16>, vector<128x128xbf16>, vector<4x128xf32> -> vector<4x128xf32>
    %174 = arith.addf %169, %173 : vector<4x128xf32>
    %175 = vector.extract_strided_slice %165 {offsets = [2, 0], sizes = [4, 128], strides = [1, 1]} : vector<6x128xbf16> to vector<4x128xbf16>
    %c2_145 = arith.constant 2 : index
    %c0_146 = arith.constant 0 : index
    %c0_147 = arith.constant 0 : index
    %176 = vector.load %arg20[%c2_145, %c0_146, %c0_147] : memref<3x128x128xbf16, #tpu.memory_space<vmem>>, vector<1x128x128xbf16>
    %177 = vector.shape_cast %176 : vector<1x128x128xbf16> to vector<128x128xbf16>
    %cst_148 = arith.constant dense<0.000000e+00> : vector<4x128xf32>
    %178 = tpu.matmul %175, %177, %cst_148 {dimension_numbers = #tpu.dot_dimension_numbers<[1], [0], [0], [1], [0, 0, 1, 1], [], []>} : vector<4x128xbf16>, vector<128x128xbf16>, vector<4x128xf32> -> vector<4x128xf32>
    %179 = arith.addf %174, %178 : vector<4x128xf32>
    %c0_149 = arith.constant 0 : index
    %c0_150 = arith.constant 0 : index
    %180 = vector.load %arg21[%c0_149, %c0_150] : memref<1x128xf32, #tpu.memory_space<vmem>>, vector<1x128xf32>
    %181 = vector.broadcast %180 : vector<1x128xf32> to vector<4x128xf32>
    %182 = arith.addf %179, %181 : vector<4x128xf32>
    %cst_151 = arith.constant 0.000000e+00 : f32
    %183 = vector.broadcast %cst_151 : f32 to vector<4x128xf32>
    %184 = arith.maximumf %182, %183 : vector<4x128xf32>
    %185 = arith.truncf %184 : vector<4x128xf32> to vector<4x128xbf16>
    %c0_152 = arith.constant 0 : index
    %c0_153 = arith.constant 0 : index
    %186 = vector.load %arg22[%c0_152, %c0_153] : memref<128x128xbf16, #tpu.memory_space<vmem>>, vector<128x128xbf16>
    %cst_154 = arith.constant dense<0.000000e+00> : vector<4x128xf32>
    %187 = tpu.matmul %185, %186, %cst_154 {dimension_numbers = #tpu.dot_dimension_numbers<[1], [0], [0], [1], [0, 0, 1, 1], [], []>} : vector<4x128xbf16>, vector<128x128xbf16>, vector<4x128xf32> -> vector<4x128xf32>
    %c0_155 = arith.constant 0 : index
    %c0_156 = arith.constant 0 : index
    %188 = vector.load %arg23[%c0_155, %c0_156] : memref<1x128xf32, #tpu.memory_space<vmem>>, vector<1x128xf32>
    %189 = vector.broadcast %188 : vector<1x128xf32> to vector<4x128xf32>
    %190 = arith.addf %187, %189 : vector<4x128xf32>
    %c8_157 = arith.constant 8 : index
    %c0_158 = arith.constant 0 : index
    %191 = vector.load %arg29[%c8_157, %c0_158] : memref<20x128xf32, #tpu.memory_space<vmem>>, vector<4x128xf32>
    %192 = arith.addf %191, %190 : vector<4x128xf32>
    %c8_159 = arith.constant 8 : index
    %c0_160 = arith.constant 0 : index
    %193 = vector.load %arg29[%c8_159, %c0_160] : memref<20x128xf32, #tpu.memory_space<vmem>>, vector<4x128xf32>
    tpu.vector_store %arg29[%c8_159, %c0_160], %192 {strides = array<i32>} : memref<20x128xf32, #tpu.memory_space<vmem>>, vector<4x128xf32>,
    %c7_161 = arith.constant 7 : index
    %c0_162 = arith.constant 0 : index
    %194 = vector.load %arg29[%c7_161, %c0_162] : memref<20x128xf32, #tpu.memory_space<vmem>>, vector<6x128xf32>
    %195 = arith.truncf %194 : vector<6x128xf32> to vector<6x128xbf16>
    %196 = vector.extract_strided_slice %195 {offsets = [0, 0], sizes = [4, 128], strides = [1, 1]} : vector<6x128xbf16> to vector<4x128xbf16>
    %c0_163 = arith.constant 0 : index
    %c0_164 = arith.constant 0 : index
    %c0_165 = arith.constant 0 : index
    %197 = vector.load %arg24[%c0_163, %c0_164, %c0_165] : memref<3x128x128xbf16, #tpu.memory_space<vmem>>, vector<1x128x128xbf16>
    %198 = vector.shape_cast %197 : vector<1x128x128xbf16> to vector<128x128xbf16>
    %cst_166 = arith.constant dense<0.000000e+00> : vector<4x128xf32>
    %199 = tpu.matmul %196, %198, %cst_166 {dimension_numbers = #tpu.dot_dimension_numbers<[1], [0], [0], [1], [0, 0, 1, 1], [], []>} : vector<4x128xbf16>, vector<128x128xbf16>, vector<4x128xf32> -> vector<4x128xf32>
    %200 = vector.extract_strided_slice %195 {offsets = [1, 0], sizes = [4, 128], strides = [1, 1]} : vector<6x128xbf16> to vector<4x128xbf16>
    %c1_167 = arith.constant 1 : index
    %c0_168 = arith.constant 0 : index
    %c0_169 = arith.constant 0 : index
    %201 = vector.load %arg24[%c1_167, %c0_168, %c0_169] : memref<3x128x128xbf16, #tpu.memory_space<vmem>>, vector<1x128x128xbf16>
    %202 = vector.shape_cast %201 : vector<1x128x128xbf16> to vector<128x128xbf16>
    %cst_170 = arith.constant dense<0.000000e+00> : vector<4x128xf32>
    %203 = tpu.matmul %200, %202, %cst_170 {dimension_numbers = #tpu.dot_dimension_numbers<[1], [0], [0], [1], [0, 0, 1, 1], [], []>} : vector<4x128xbf16>, vector<128x128xbf16>, vector<4x128xf32> -> vector<4x128xf32>
    %204 = arith.addf %199, %203 : vector<4x128xf32>
    %205 = vector.extract_strided_slice %195 {offsets = [2, 0], sizes = [4, 128], strides = [1, 1]} : vector<6x128xbf16> to vector<4x128xbf16>
    %c2_171 = arith.constant 2 : index
    %c0_172 = arith.constant 0 : index
    %c0_173 = arith.constant 0 : index
    %206 = vector.load %arg24[%c2_171, %c0_172, %c0_173] : memref<3x128x128xbf16, #tpu.memory_space<vmem>>, vector<1x128x128xbf16>
    %207 = vector.shape_cast %206 : vector<1x128x128xbf16> to vector<128x128xbf16>
    %cst_174 = arith.constant dense<0.000000e+00> : vector<4x128xf32>
    %208 = tpu.matmul %205, %207, %cst_174 {dimension_numbers = #tpu.dot_dimension_numbers<[1], [0], [0], [1], [0, 0, 1, 1], [], []>} : vector<4x128xbf16>, vector<128x128xbf16>, vector<4x128xf32> -> vector<4x128xf32>
    %209 = arith.addf %204, %208 : vector<4x128xf32>
    %c0_175 = arith.constant 0 : index
    %c0_176 = arith.constant 0 : index
    %210 = vector.load %arg25[%c0_175, %c0_176] : memref<1x128xf32, #tpu.memory_space<vmem>>, vector<1x128xf32>
    %211 = vector.broadcast %210 : vector<1x128xf32> to vector<4x128xf32>
    %212 = arith.addf %209, %211 : vector<4x128xf32>
    %c0_177 = arith.constant 0 : index
    %c0_178 = arith.constant 0 : index
    %c0_179 = arith.constant 0 : index
    %213 = vector.load %arg26[%c0_177, %c0_178, %c0_179] : memref<1x4x128xf32, #tpu.memory_space<vmem>>, vector<1x4x128xf32>
    %214 = vector.shape_cast %213 : vector<1x4x128xf32> to vector<4x128xf32>
    %215 = vector.shape_cast %212 : vector<4x128xf32> to vector<1x4x128xf32>
    tpu.vector_store %arg26[%c0_177, %c0_178, %c0_179], %215 {strides = array<i32>} : memref<1x4x128xf32, #tpu.memory_space<vmem>>, vector<1x4x128xf32>,
    return
  }
  func.func @transform_0(%arg0: i32) -> (i32, i32, i32) {
    %c0_i32 = arith.constant 0 : i32
    %c0_i32_0 = arith.constant 0 : i32
    %c0_i32_1 = arith.constant 0 : i32
    return %arg0, %c0_i32, %c0_i32_0 : i32, i32, i32
  }
  func.func @transform_1(%arg0: i32) -> (i32, i32, i32) {
    %c0_i32 = arith.constant 0 : i32
    %c0_i32_0 = arith.constant 0 : i32
    %c0_i32_1 = arith.constant 0 : i32
    %c0_i32_2 = arith.constant 0 : i32
    return %c0_i32, %c0_i32_0, %c0_i32_1 : i32, i32, i32
  }
  func.func @transform_2(%arg0: i32) -> (i32, i32) {
    %c0_i32 = arith.constant 0 : i32
    %c0_i32_0 = arith.constant 0 : i32
    %c0_i32_1 = arith.constant 0 : i32
    return %c0_i32, %c0_i32_0 : i32, i32
  }
  func.func @transform_3(%arg0: i32) -> (i32, i32, i32) {
    %c0_i32 = arith.constant 0 : i32
    %c0_i32_0 = arith.constant 0 : i32
    %c0_i32_1 = arith.constant 0 : i32
    %c0_i32_2 = arith.constant 0 : i32
    return %c0_i32, %c0_i32_0, %c0_i32_1 : i32, i32, i32
  }
  func.func @transform_4(%arg0: i32) -> (i32, i32) {
    %c0_i32 = arith.constant 0 : i32
    %c0_i32_0 = arith.constant 0 : i32
    %c0_i32_1 = arith.constant 0 : i32
    return %c0_i32, %c0_i32_0 : i32, i32
  }
  func.func @transform_5(%arg0: i32) -> (i32, i32, i32) {
    %c0_i32 = arith.constant 0 : i32
    %c0_i32_0 = arith.constant 0 : i32
    %c0_i32_1 = arith.constant 0 : i32
    %c0_i32_2 = arith.constant 0 : i32
    return %c0_i32, %c0_i32_0, %c0_i32_1 : i32, i32, i32
  }
  func.func @transform_6(%arg0: i32) -> (i32, i32) {
    %c0_i32 = arith.constant 0 : i32
    %c0_i32_0 = arith.constant 0 : i32
    %c0_i32_1 = arith.constant 0 : i32
    return %c0_i32, %c0_i32_0 : i32, i32
  }
  func.func @transform_7(%arg0: i32) -> (i32, i32) {
    %c0_i32 = arith.constant 0 : i32
    %c0_i32_0 = arith.constant 0 : i32
    %c0_i32_1 = arith.constant 0 : i32
    return %c0_i32, %c0_i32_0 : i32, i32
  }
  func.func @transform_8(%arg0: i32) -> (i32, i32) {
    %c0_i32 = arith.constant 0 : i32
    %c0_i32_0 = arith.constant 0 : i32
    %c0_i32_1 = arith.constant 0 : i32
    return %c0_i32, %c0_i32_0 : i32, i32
  }
  func.func @transform_9(%arg0: i32) -> (i32, i32, i32) {
    %c0_i32 = arith.constant 0 : i32
    %c0_i32_0 = arith.constant 0 : i32
    %c0_i32_1 = arith.constant 0 : i32
    %c0_i32_2 = arith.constant 0 : i32
    return %c0_i32, %c0_i32_0, %c0_i32_1 : i32, i32, i32
  }
  func.func @transform_10(%arg0: i32) -> (i32, i32) {
    %c0_i32 = arith.constant 0 : i32
    %c0_i32_0 = arith.constant 0 : i32
    %c0_i32_1 = arith.constant 0 : i32
    return %c0_i32, %c0_i32_0 : i32, i32
  }
  func.func @transform_11(%arg0: i32) -> (i32, i32) {
    %c0_i32 = arith.constant 0 : i32
    %c0_i32_0 = arith.constant 0 : i32
    %c0_i32_1 = arith.constant 0 : i32
    return %c0_i32, %c0_i32_0 : i32, i32
  }
  func.func @transform_12(%arg0: i32) -> (i32, i32) {
    %c0_i32 = arith.constant 0 : i32
    %c0_i32_0 = arith.constant 0 : i32
    %c0_i32_1 = arith.constant 0 : i32
    return %c0_i32, %c0_i32_0 : i32, i32
  }
  func.func @transform_13(%arg0: i32) -> (i32, i32, i32) {
    %c0_i32 = arith.constant 0 : i32
    %c0_i32_0 = arith.constant 0 : i32
    %c0_i32_1 = arith.constant 0 : i32
    %c0_i32_2 = arith.constant 0 : i32
    return %c0_i32, %c0_i32_0, %c0_i32_1 : i32, i32, i32
  }
  func.func @transform_14(%arg0: i32) -> (i32, i32) {
    %c0_i32 = arith.constant 0 : i32
    %c0_i32_0 = arith.constant 0 : i32
    %c0_i32_1 = arith.constant 0 : i32
    return %c0_i32, %c0_i32_0 : i32, i32
  }
  func.func @transform_15(%arg0: i32) -> (i32, i32, i32) {
    %c0_i32 = arith.constant 0 : i32
    %c0_i32_0 = arith.constant 0 : i32
    %c0_i32_1 = arith.constant 0 : i32
    %c0_i32_2 = arith.constant 0 : i32
    return %c0_i32, %c0_i32_0, %c0_i32_1 : i32, i32, i32
  }
  func.func @transform_16(%arg0: i32) -> (i32, i32) {
    %c0_i32 = arith.constant 0 : i32
    %c0_i32_0 = arith.constant 0 : i32
    %c0_i32_1 = arith.constant 0 : i32
    return %c0_i32, %c0_i32_0 : i32, i32
  }
  func.func @transform_17(%arg0: i32) -> (i32, i32) {
    %c0_i32 = arith.constant 0 : i32
    %c0_i32_0 = arith.constant 0 : i32
    %c0_i32_1 = arith.constant 0 : i32
    return %c0_i32, %c0_i32_0 : i32, i32
  }
  func.func @transform_18(%arg0: i32) -> (i32, i32) {
    %c0_i32 = arith.constant 0 : i32
    %c0_i32_0 = arith.constant 0 : i32
    %c0_i32_1 = arith.constant 0 : i32
    return %c0_i32, %c0_i32_0 : i32, i32
  }
  func.func @transform_19(%arg0: i32) -> (i32, i32, i32) {
    %c0_i32 = arith.constant 0 : i32
    %c0_i32_0 = arith.constant 0 : i32
    %c0_i32_1 = arith.constant 0 : i32
    %c0_i32_2 = arith.constant 0 : i32
    return %c0_i32, %c0_i32_0, %c0_i32_1 : i32, i32, i32
  }
  func.func @transform_20(%arg0: i32) -> (i32, i32) {
    %c0_i32 = arith.constant 0 : i32
    %c0_i32_0 = arith.constant 0 : i32
    %c0_i32_1 = arith.constant 0 : i32
    return %c0_i32, %c0_i32_0 : i32, i32
  }
  func.func @transform_21(%arg0: i32) -> (i32, i32) {
    %c0_i32 = arith.constant 0 : i32
    %c0_i32_0 = arith.constant 0 : i32
    %c0_i32_1 = arith.constant 0 : i32
    return %c0_i32, %c0_i32_0 : i32, i32
  }
  func.func @transform_22(%arg0: i32) -> (i32, i32) {
    %c0_i32 = arith.constant 0 : i32
    %c0_i32_0 = arith.constant 0 : i32
    %c0_i32_1 = arith.constant 0 : i32
    return %c0_i32, %c0_i32_0 : i32, i32
  }
  func.func @transform_23(%arg0: i32) -> (i32, i32, i32) {
    %c0_i32 = arith.constant 0 : i32
    %c0_i32_0 = arith.constant 0 : i32
    %c0_i32_1 = arith.constant 0 : i32
    %c0_i32_2 = arith.constant 0 : i32
    return %c0_i32, %c0_i32_0, %c0_i32_1 : i32, i32, i32
  }
  func.func @transform_24(%arg0: i32) -> (i32, i32) {
    %c0_i32 = arith.constant 0 : i32
    %c0_i32_0 = arith.constant 0 : i32
    %c0_i32_1 = arith.constant 0 : i32
    return %c0_i32, %c0_i32_0 : i32, i32
  }
  func.func @transform_25(%arg0: i32) -> (i32, i32, i32) {
    %c0_i32 = arith.constant 0 : i32
    %c0_i32_0 = arith.constant 0 : i32
    %c0_i32_1 = arith.constant 0 : i32
    return %arg0, %c0_i32, %c0_i32_0 : i32, i32, i32
  }
}

</mosaic_0001>

<bundles_post_ra>
// kernel: encoder_forward_pallas.1
= control target key start
LH: loop header
LB: loop body
LE: loop exit
PB: predicated region body
PF: predicated region fallthrough
CT: control target
= control target key end

     0   :  { %s5834_s0 = inlined_call_operand.vmem [shape: f32[2,18,3], index: 0, kind: input, shape index: {}]   ;;  %s5835_s1 = inlined_call_operand.hbm [shape: bf16[3,3,128], index: 1, kind: input, shape index: {}]   ;;  %s5836_s2 = inlined_call_operand.hbm [shape: f32[1,128], index: 2, kind: input, shape index: {}]   ;;  %s5837_s3 = inlined_call_operand.hbm [shape: bf16[2,256,128], index: 3, kind: input, shape index: {}]   ;;  %s5838_s4 = inlined_call_operand.hbm [shape: f32[1,128], index: 4, kind: input, shape index: {}]   ;;  %s5839_s5 = inlined_call_operand.hbm [shape: bf16[3,128,128], index: 5, kind: input, shape index: {}]   ;;  %s5840_s6 = inlined_call_operand.hbm [shape: f32[1,128], index: 6, kind: input, shape index: {}]   ;;  %s5841_s7 = inlined_call_operand.vmem [shape: bf16[128,128], index: 7, kind: input, shape index: {}]   ;;  %s5842_s8 = inlined_call_operand.vmem [shape: f32[1,128], index: 8, kind: input, shape index: {}]   ;;  %s5843_s9 = inlined_call_operand.hbm [shape: bf16[3,128,128], index: 9, kind: input, shape index: {}]   ;;  %s5844_s10 = inlined_call_operand.vmem [shape: f32[1,128], index: 10, kind: input, shape index: {}]   ;;  %s5845_s11 = inlined_call_operand.vmem [shape: bf16[128,128], index: 11, kind: input, shape index: {}]   ;;  %s5846_s12 = inlined_call_operand.vmem [shape: f32[1,128], index: 12, kind: input, shape index: {}]   ;;  %s5847_s13 = inlined_call_operand.hbm [shape: bf16[2,256,128], index: 13, kind: input, shape index: {}]   ;;  %s5848_s14 = inlined_call_operand.hbm [shape: f32[1,128], index: 14, kind: input, shape index: {}]   ;;  %s5849_s15 = inlined_call_operand.hbm [shape: bf16[3,128,128], index: 15, kind: input, shape index: {}]   ;;  %s5850_s16 = inlined_call_operand.vmem [shape: f32[1,128], index: 16, kind: input, shape index: {}]   ;;  %s5851_s17 = inlined_call_operand.hbm [shape: bf16[128,128], index: 17, kind: input, shape index: {}]   ;;  %s5852_s18 = inlined_call_operand.vmem [shape: f32[1,128], index: 18, kind: input, shape index: {}]   ;;  %s5853_s19 = inlined_call_operand.hbm [shape: bf16[3,128,128], index: 19, kind: input, shape index: {}]   ;;  %s5854_s20 = inlined_call_operand.vmem [shape: f32[1,128], index: 20, kind: input, shape index: {}]   ;;  %s5855_s21 = inlined_call_operand.hbm [shape: bf16[128,128], index: 21, kind: input, shape index: {}]   ;;  %s5856_s22 = inlined_call_operand.vmem [shape: f32[1,128], index: 22, kind: input, shape index: {}]   ;;  %s5857_s23 = inlined_call_operand.hbm [shape: bf16[3,128,128], index: 23, kind: input, shape index: {}]   ;;  %s5858_s24 = inlined_call_operand.hbm [shape: f32[1,128], index: 24, kind: input, shape index: {}]   ;;  %s5859_s25 = inlined_call_operand.vmem [shape: f32[2,4,128], index: 25, kind: output, shape index: {}]  }
   0x1   :  { %5862 = sst [smem:[#allocation37_spill]] %s5834_s0 }
   0x2   :  { %5863 = sst [smem:[#allocation38_spill]] %s5835_s1 }
   0x3   :  { %5864 = sst [smem:[#allocation39_spill]] %s5836_s2 }
   0x4   :  { %5865 = sst [smem:[#allocation40_spill]] %s5837_s3 }
   0x5   :  { %5866 = sst [smem:[#allocation41_spill]] %s5838_s4 }
   0x6   :  { %5867 = sst [smem:[#allocation42_spill]] %s5839_s5 }
   0x7   :  { %5868 = sst [smem:[#allocation43_spill]] %s5840_s6 }
   0x8   :  { %5869 = sst [smem:[#allocation44_spill]] %s5841_s7 }
   0x9   :  { %5870 = sst [smem:[#allocation45_spill]] %s5842_s8 }
   0xa   :  { %5871 = sst [smem:[#allocation46_spill]] %s5843_s9 }
   0xb   :  { %5872 = sst [smem:[#allocation47_spill]] %s5847_s13 }
   0xc   :  { %5873 = sst [smem:[#allocation48_spill]] %s5849_s15 }
   0xd   :  { %5874 = sst [smem:[#allocation49_spill]] %s5853_s19 }
   0xe   :  { %5875 = sst [smem:[#allocation50_spill]] %s5856_s22 }
   0xf   :  { %5876 = sst [smem:[#allocation51_spill]] %s5857_s23 }
  0x10   :  { %5877 = sst [smem:[#allocation52_spill]] %s5859_s25 }
  0x11   :  { %30 = vsyncpa [#allocation6], 0 }
  0x12   :  { %31 = vsyncpa [#allocation8], 0 }
  0x13   :  { %32 = vsyncpa [#allocation11], 0 }
  0x14   :  { %33 = vsyncpa [#allocation14], 0 }
  0x15   :  { %34 = vsyncpa [#allocation17], 0 }
  0x16   :  { %35 = vsyncpa [#allocation20], 0 }
  0x17   :  { %36 = vsyncpa [#allocation23], 0 }
  0x18   :  { %37 = vsyncpa [#allocation26], 0  ;;  %s5581_s29 = smov 0  }
  0x19 LB: > { %5878 = sst [smem:[#allocation36_spill]] %s5428_s29  ;;  %s5590_s3 = sadd.s32 4294967295, %s5428_s29   ;;  %s5428_s29 = sphi %s5581_s29, %s43_s29  }
  0x1a   : > { %s5879_s30 = sld [smem:[#allocation39_spill]]  ;;  %p3638_p0 = scmp.ge.s32.totalorder %s5428_s29, 1 }
  0x1b   : > { %p604_p1 = scmp.lt.s32.totalorder %s5428_s29, 3  ;;  %p4869_p2 = scmp.eq.s32.totalorder %s5590_s3, 0 }
  0x1c   : > { %s5430_s1 = smov [#allocation7]   ;;  %s5881_s28 = sld [smem:[#allocation41_spill]] }
  0x1d   : > { %p5595_p3 = pnand %p3638_p0, %p604_p1  ;;  %s632_s8 = sshll.u32 %s5430_s1, 4  ;;  %s633_s8 = int_to_ptr.vmem [resolvable:$true] %s632_s8 }
  0x1e   : > { %s5882_s2 = sld [smem:[#allocation43_spill]]  ;;  %s5431_s1 = smov [#allocation10]  }
  0x1f   : > { %p4823_p4 = pneg %p5595_p3  ;;  %s658_s29 = sshll.u32 %s5431_s1, 4  ;;  %s659_s29 = int_to_ptr.vmem [resolvable:$true] %s658_s29 }
  0x20   : > { %s630_s7 = sshll.u32 %s5879_s30, 4  ;;  %s5432_s27 = smov [#allocation13]   ;;  %s631_s7 = int_to_ptr.hbm [resolvable:$true] %s630_s7 }
  0x21   : > { %p5609_p5 = pnand %p4869_p2, %p4823_p4  ;;  %s684_s4 = sshll.u32 %s5432_s27, 4  ;;  %s685_s4 = int_to_ptr.vmem [resolvable:$true] %s684_s4 }
  0x22   : > { %s656_s9 = sshll.u32 %s5881_s28, 4  ;;  %s5884_s13 = sld [smem:[#allocation47_spill]]  ;;  %s657_s9 = int_to_ptr.hbm [resolvable:$true] %s656_s9 }
  0x23   : > { %4829 = dma.hbm_to_vmem [thread:$0]  (!%p5609_p5), %s631_s7, 16, %s633_s8, [#allocation8]  }
  0x24   : > { %s682_s6 = sshll.u32 %s5882_s2, 4  ;;  %s5433_s2 = smov [#allocation16]   ;;  %s683_s6 = int_to_ptr.hbm [resolvable:$true] %s682_s6 }
  0x25   : > { %4835 = dma.hbm_to_vmem [thread:$0]  (!%p5609_p5), %s657_s9, 16, %s659_s29, [#allocation11]  }
  0x26   : > { %4841 = dma.hbm_to_vmem [thread:$0]  (!%p5609_p5), %s683_s6, 16, %s685_s4, [#allocation14]  }
  0x27   : > { %s724_s1 = sshll.u32 %s5433_s2, 4  ;;  %s5885_s15 = sld [smem:[#allocation48_spill]]  ;;  %s725_s1 = int_to_ptr.vmem [resolvable:$true] %s724_s1 }
  0x28   : > { %s722_s0 = sshll.u32 %s5884_s13, 4  ;;  %s5434_s29 = smov 64   ;;  %s723_s0 = int_to_ptr.hbm [resolvable:$true] %s722_s0 }
  0x29   : > { %s5435_s8 = smov 4   ;;  %s5436_s9 = smov [#allocation19]  }
  0x2a   : > { %4847 = dma.hbm_to_vmem [thread:$0]  (!%p5609_p5), %s723_s0, 4096, %s725_s1, [#allocation17], %s5434_s29, %s5434_s29, %s5435_s8  }
  0x2b   : > { %s750_s6 = sshll.u32 %s5436_s9, 4  ;;  %s5886_s19 = sld [smem:[#allocation49_spill]]  ;;  %s751_s6 = int_to_ptr.vmem [resolvable:$true] %s750_s6 }
  0x2c   : > { %s5887_s23 = sld [smem:[#allocation51_spill]]  ;;  %s5437_s0 = smov [#allocation22]  }
  0x2d   : > { %s748_s7 = sshll.u32 %s5885_s15, 4  ;;  %s784_s2 = sshll.u32 %s5437_s0, 4  ;;  %s749_s7 = int_to_ptr.hbm [resolvable:$true] %s748_s7  ;;  %s785_s2 = int_to_ptr.vmem [resolvable:$true] %s784_s2 }
  0x2e   : > { %4853 = dma.hbm_to_vmem [thread:$0]  (!%p5609_p5), %s749_s7, 3072, %s751_s6, [#allocation20], %s5434_s29, %s5434_s29, %s5435_s8  }
  0x2f   : > { %s5438_s1 = smov [#allocation25]   ;;  %s5888_s13 = sld [smem:[#allocation38_spill]] }
  0x30   : > { %s818_s9 = sshll.u32 %s5438_s1, 4  ;;  %s5439_s6 = smov [#allocation5]   ;;  %s819_s9 = int_to_ptr.vmem [resolvable:$true] %s818_s9 }
  0x31   : > { %s782_s28 = sshll.u32 %s5886_s19, 4  ;;  %s617_s22 = sshll.u32 %s5439_s6, 4  ;;  %s783_s28 = int_to_ptr.hbm [resolvable:$true] %s782_s28  ;;  %s618_s22 = int_to_ptr.vmem [resolvable:$true] %s617_s22 }
  0x32   : > { %s816_s5 = sshll.u32 %s5887_s23, 4  ;;  %s5440_s1 = smov 32   ;;  %s817_s5 = int_to_ptr.hbm [resolvable:$true] %s816_s5 }
  0x33   : > { %4859 = dma.hbm_to_vmem [thread:$0]  (!%p5609_p5), %s783_s28, 3072, %s785_s2, [#allocation23], %s5434_s29, %s5434_s29, %s5435_s8  }
  0x34   : > { %4865 = dma.hbm_to_vmem [thread:$0]  (!%p5609_p5), %s817_s5, 3072, %s819_s9, [#allocation26], %s5434_s29, %s5434_s29, %s5435_s8  }
  0x35   : > { %s615_s7 = sshll.u32 %s5888_s13, 4  ;;  %s5889_s28 = sld [smem:[#allocation40_spill]]  ;;  %s616_s7 = int_to_ptr.hbm [resolvable:$true] %s615_s7 }
  0x36   : > { %s5441_s15 = smov 2   ;;  %s5442_s13 = smov [#allocation9]  }
  0x37   : > { %4826 = dma.hbm_to_vmem [thread:$0]  (!%p5609_p5), %s616_s7, 96, %s618_s22, [#allocation6], %s5440_s1, %s5440_s1, %s5441_s15  }
  0x38   : > { %s643_s27 = sshll.u32 %s5442_s13, 4  ;;  %s5890_s23 = sld [smem:[#allocation42_spill]]  ;;  %s644_s27 = int_to_ptr.vmem [resolvable:$true] %s643_s27 }
  0x39   : > { %s5891_s25 = sld [smem:[#allocation46_spill]]  ;;  %s5443_s15 = smov [#allocation12]  }
  0x3a   : > { %s669_s7 = sshll.u32 %s5443_s15, 4  ;;  %s5444_s19 = smov [#allocation15]   ;;  %s670_s7 = int_to_ptr.vmem [resolvable:$true] %s669_s7 }
  0x3b   : > { %s641_s2 = sshll.u32 %s5889_s28, 4  ;;  %s5445_s4 = smov [#allocation18]   ;;  %s642_s2 = int_to_ptr.hbm [resolvable:$true] %s641_s2 }
  0x3c   : > { %4832 = dma.hbm_to_vmem [thread:$0]  (!%p5609_p5), %s642_s2, 4096, %s644_s27, [#allocation8], %s5434_s29, %s5434_s29, %s5435_s8  }
  0x3d   : > { %s737_s2 = sshll.u32 %s5848_s14, 4  ;;  %s765_s27 = sshll.u32 %s5851_s17, 4  ;;  %s738_s2 = int_to_ptr.hbm [resolvable:$true] %s737_s2  ;;  %s766_s27 = int_to_ptr.hbm [resolvable:$true] %s765_s27 }
  0x3e   : > { %s667_s5 = sshll.u32 %s5890_s23, 4  ;;  %s701_s23 = sshll.u32 %s5444_s19, 4  ;;  %s668_s5 = int_to_ptr.hbm [resolvable:$true] %s667_s5  ;;  %s702_s23 = int_to_ptr.vmem [resolvable:$true] %s701_s23 }
  0x3f   : > { %s699_s0 = sshll.u32 %s5891_s25, 4  ;;  %s5446_s9 = smov [#allocation21]   ;;  %s700_s0 = int_to_ptr.hbm [resolvable:$true] %s699_s0 }
  0x40   : > { %4838 = dma.hbm_to_vmem [thread:$0]  (!%p5609_p5), %s668_s5, 3072, %s670_s7, [#allocation11], %s5434_s29, %s5434_s29, %s5435_s8  }
  0x41   : > { %4844 = dma.hbm_to_vmem [thread:$0]  (!%p5609_p5), %s700_s0, 3072, %s702_s23, [#allocation14], %s5434_s29, %s5434_s29, %s5435_s8  }
  0x42   : > { %s739_s5 = sshll.u32 %s5445_s4, 4  ;;  %s767_s6 = sshll.u32 %s5446_s9, 4  ;;  %s740_s5 = int_to_ptr.vmem [resolvable:$true] %s739_s5  ;;  %s768_s6 = int_to_ptr.vmem [resolvable:$true] %s767_s6 }
  0x43   : > { %4850 = dma.hbm_to_vmem [thread:$0]  (!%p5609_p5), %s738_s2, 16, %s740_s5, [#allocation17]  }
  0x44   : > { %s799_s7 = sshll.u32 %s5855_s21, 4  ;;  %s831_s23 = sshll.u32 %s5858_s24, 4  ;;  %s800_s7 = int_to_ptr.hbm [resolvable:$true] %s799_s7  ;;  %s832_s23 = int_to_ptr.hbm [resolvable:$true] %s831_s23 }
  0x45   : > { %4856 = dma.hbm_to_vmem [thread:$0]  (!%p5609_p5), %s766_s27, 1024, %s768_s6, [#allocation20], %s5434_s29, %s5434_s29, %s5435_s8  }
  0x46   : > { %s5447_s22 = smov [#allocation24]   ;;  %s5448_s2 = smov [#allocation27]  }
  0x47   : > { %s801_s28 = sshll.u32 %s5447_s22, 4  ;;  %s833_s1 = sshll.u32 %s5448_s2, 4  ;;  %s802_s28 = int_to_ptr.vmem [resolvable:$true] %s801_s28  ;;  %s834_s1 = int_to_ptr.vmem [resolvable:$true] %s833_s1 }
  0x48   : > { %4862 = dma.hbm_to_vmem [thread:$0]  (!%p5609_p5), %s800_s7, 1024, %s802_s28, [#allocation23], %s5434_s29, %s5434_s29, %s5435_s8  }
  0x49   : > { %4868 = dma.hbm_to_vmem [thread:$0]  (!%p5609_p5), %s832_s23, 16, %s834_s1, [#allocation26]  }
  0x4a   : > { %854 = sbr.rel (%p5595_p3) target bundleno = 1955 (0x7a3), region = 120 }
  0x4f   : > { %5395 = dma.done.wait (%p4869_p2), [#allocation6], 96  }
  0x50   : > { %5397 = vsyncadd (%p4869_p2), [#allocation6], 4294967200 }
  0x51   : > { %5399 = dma.done.wait (%p4869_p2), [#allocation8], 4112  }
  0x52   : > { %5401 = vsyncadd (%p4869_p2), [#allocation8], 4294963184 }
  0x53   : > { %5403 = dma.done.wait (%p4869_p2), [#allocation11], 3088  }
  0x54   : > { %5405 = vsyncadd (%p4869_p2), [#allocation11], 4294964208 }
  0x55   : > { %5407 = dma.done.wait (%p4869_p2), [#allocation14], 3088  }
  0x56   : > { %5409 = vsyncadd (%p4869_p2), [#allocation14], 4294964208 }
  0x57   : > { %5411 = dma.done.wait (%p4869_p2), [#allocation17], 4112  }
  0x58   : > { %5413 = vsyncadd (%p4869_p2), [#allocation17], 4294963184 }
  0x59   : > { %5415 = dma.done.wait (%p4869_p2), [#allocation20], 4096  }
  0x5a   : > { %5417 = vsyncadd (%p4869_p2), [#allocation20], 4294963200 }
  0x5b   : > { %5419 = dma.done.wait (%p4869_p2), [#allocation23], 4096  }
  0x5c   : > { %5421 = vsyncadd (%p4869_p2), [#allocation23], 4294963200 }
  0x5d   : > { %5423 = dma.done.wait (%p4869_p2), [#allocation26], 3088  }
  0x5e   : > { %5425 = vsyncadd (%p4869_p2), [#allocation26], 4294964208  ;;  %vm1042_vm0 = vcmask 1040384   ;;  %p992_p6 = scmp.lt.s32.totalorder %s5590_s3, 1  ;;  %vm1043_vm1 = vcmask 1041408   ;;  %v5449_v0 = vmov 65535  }
  0x5f   : > { %v1044_v1 = vsel %vm1042_vm0, 4294967295, %v5449_v0  ;;  %s5892_s8 = sld [smem:[#allocation37_spill]]  ;;  %v1016_v3 = vld [vmem:[#allocation5 + $0x2] sm:$0x3]  ;;  %v1083_v10 = vld [vmem:[#allocation5 + $0x4] sm:$0x3] }
  0x60   : > { %s5899_s3 = smov (!%p992_p6, %s5590_s3), 1  ;;  %v1045_v2 = vsel %vm1043_vm1, %v1044_v1, 0  ;;  %v1014_v11 = vld [vmem:[#allocation5] sm:$0x3]  ;;  %vm1038_vm2 = vcmask 23552   ;;  %vm1084_vm4 = vcmask 1046528  }
  0x61   : > { %s4762_s26 = smul.u32 24, %s5899_s3  ;;  %v1047_v6 = vand.u32 %v1045_v2, %v1016_v3  ;;  %v1092_v13 = vand.u32 %v1083_v10, %v1045_v2  ;;  %v1066_v14 = vand.u32 %v1045_v2, %v1014_v11  ;;  %vm1025_vm3 = vsmask.f32 7424  ;;  %v4553_v30 = vld [vmem:[#allocation9 + $0x38] sm:$0xff]  ;;  %v4552_v33 = vld [vmem:[#allocation9 + $0x30] sm:$0xff]  ;;  %v4551_v37 = vld [vmem:[#allocation9 + $0x28] sm:$0xff] }
  0x62   : > { %v4561_v31 = vld [vmem:[#allocation9 + $0x78] sm:$0xff]  ;;  %v4560_v35 = vld [vmem:[#allocation9 + $0x70] sm:$0xff]  ;;  %v5450_v39 = vmov 0.0   ;;  %v4559_v40 = vld [vmem:[#allocation9 + $0x68] sm:$0xff]  ;;  %s5893_s5 = sld [smem:[#allocation44_spill]]  ;;  %s3672_s22 = sshll.u32 %s5899_s3, 2 }
  0x63   : > { %1056 = vmatpush.bf16.msra.mxu2 %v1047_v6  ;;  %1075 = vmatpush.bf16.msra.mxu1 %v1066_v14  ;;  %v4569_v32 = vld [vmem:[#allocation9 + $0xb8] sm:$0xff]  ;;  %v4568_v36 = vld [vmem:[#allocation9 + $0xb0] sm:$0xff]  ;;  %1002 = vst [vmem:[#allocation2] sm:$0xff] %v5450_v39  ;;  %v4567_v41 = vld [vmem:[#allocation9 + $0xa8] sm:$0xff]  ;;  %s5894_s4 = sld [smem:[#allocation45_spill]] }
  0x64   : > { %1306 = vmatpush.bf16.msra.mxu3 %v4569_v32  ;;  %v4577_v34 = vld [vmem:[#allocation9 + $0xf8] sm:$0xff]  ;;  %v4576_v38 = vld [vmem:[#allocation9 + $0xf0] sm:$0xff]  ;;  %1003 = vst [vmem:[#allocation2 + $0x18] sm:$0xff] %v5450_v39  ;;  %v4550_v42 = vld [vmem:[#allocation9 + $0x20] sm:$0xff]  ;;  %s5895_s23 = sld [smem:[#allocation50_spill]] }
  0x65   : > { %s996_s13 = scalar_lea.vmem %s5892_s8, %s4762_s26  ;;  %1319 = vmatpush.bf16.msra.mxu0 %v4577_v34  ;;  %1004 = vst [vmem:[#allocation3] sm:$0xff] %v5450_v39  ;;  %v4575_v43 = vld [vmem:[#allocation9 + $0xe8] sm:$0xff]  ;;  %v4558_v44 = vld [vmem:[#allocation9 + $0x60] sm:$0xff]  ;;  %v4549_v46 = vld [vmem:[#allocation9 + $0x18] sm:$0xff]  ;;  %s5896_s1 = sld [smem:[#allocation52_spill]] }
  0x66   : > { %v1008_v4 = vld [vmem:[%s996_s13] sm:$0xff]  ;;  %v1009_v5 = vld [vmem:[%s996_s13 + $0x8] sm:$0xff]  ;;  %v1010_v7 = vld [vmem:[%s996_s13 + $0x10] sm:$0x3]  ;;  %1005 = vst [vmem:[#allocation3 + $0x10] sm:$0xff] %v5450_v39 }
  0x67   : > { %v1011_v8 = vpack.c.bf16 %v1008_v4, %v1008_v4  ;;  %v1012_v9 = vpack.c.bf16 %v1009_v5, %v1009_v5  ;;  %v1013_v12 = vpack.c.bf16 %v1010_v7, %v1010_v7  ;;  %1101 = vmatpush.bf16.msrb.mxu2 %v1092_v13  ;;  %1432 = vmatpush.bf16.msrb.mxu1 %v4553_v30  ;;  %v4566_v45 = vld [vmem:[#allocation9 + $0xa0] sm:$0xff]  ;;  %v4557_v48 = vld [vmem:[#allocation9 + $0x58] sm:$0xff]  ;;  %v4548_v51 = vld [vmem:[#allocation9 + $0x10] sm:$0xff] }
  0x68   : > { %1307 = vmatpush.bf16.msra.mxu3 %v4568_v36  ;;  %1006 = vst [vmem:[#allocation4] sm:$0xff] %v5450_v39  ;;  %v4574_v47 = vld [vmem:[#allocation9 + $0xe0] sm:$0xff]  ;;  %v4565_v49 = vld [vmem:[#allocation9 + $0x98] sm:$0xff]  ;;  %v4556_v53 = vld [vmem:[#allocation9 + $0x50] sm:$0xff] }
  0x69   : > { %v1020_v15 = vunpack.c.l.b16 %v1011_v8  ;;  %v1021_v16 = vunpack.c.l.b16 %v1012_v9  ;;  %v1022_v17 = vunpack.c.l.b16 %v1013_v12  ;;  %1320 = vmatpush.bf16.msra.mxu0 %v4576_v38  ;;  %1007 = vst [vmem:[#allocation4 + $0xc] sm:$0xff] %v5450_v39  ;;  %v4573_v52 = vld [vmem:[#allocation9 + $0xd8] sm:$0xff]  ;;  %v4564_v54 = vld [vmem:[#allocation9 + $0x90] sm:$0xff]  ;;  %v4547_v55 = vld [vmem:[#allocation9 + $0x8] sm:$0xff] }
  0x6a   : > { %v4572_v56 = vld [vmem:[#allocation9 + $0xd0] sm:$0xff]  ;;  %v4555_v57 = vld [vmem:[#allocation9 + $0x48] sm:$0xff]  ;;  %v4546_v60 = vld [vmem:[#allocation9] sm:$0xff] }
  0x6b   : > { %v1023_v18 = vpack.c.b16 %v1021_v16, %v1020_v15  ;;  %v1024_v19 = vpack.c.b16 %v1022_v17, %v1022_v17  ;;  %1433 = vmatpush.bf16.msrb.mxu1 %v4552_v33  ;;  %v4563_v58 = vld [vmem:[#allocation9 + $0x88] sm:$0xff]  ;;  %v4554_v63 = vld [vmem:[#allocation9 + $0x40] sm:$0xff]  ;;  %v4928_v2 = vld [vmem:[#allocation7] ss:$0 sm:$0xff]  ;;  %s1000_s26 = scalar_lea.vmem %s5896_s1, %s3672_s22 }
  0x6c   : > { %1308 = vmatpush.bf16.msra.mxu3 %v4567_v41  ;;  %v4571_v61 = vld [vmem:[#allocation9 + $0xc8] sm:$0xff]  ;;  %v4562_v0 = vld [vmem:[#allocation9 + $0x80] sm:$0xff]  ;;  %v4600_v39 = vld [vmem:[#allocation12 + $0xb0] sm:$0xff] }
  0x6d   : > { %v1027_v20 = vshrl.u32 %v1023_v18, 16  ;;  %v1029_v21 = vshll.u32 %v1023_v18, 16  ;;  %3674 = vmatmul.msk.bf16.vlgmr.msra.gmra.mxu1 %vm1038_vm2, %v1023_v18  ;;  %v1034_v22 = vshll.u32 %v1024_v19, 16  ;;  %v1085_v27 = vrot.slane %v1023_v18, 1  ;;  %1321 = vmatpush.bf16.msra.mxu0 %v4575_v43  ;;  %v4570_v3 = vld [vmem:[#allocation9 + $0xc0] sm:$0xff]  ;;  %v4592_v41 = vld [vmem:[#allocation12 + $0x70] sm:$0xff] }
  0x6e   : > { %v1086_v28 = vrot.slane %v1024_v19, 1  ;;  %v4585_v8 = vld [vmem:[#allocation12 + $0x38] sm:$0xff] }
  0x6f   : > { %v1031_v23 = vrot.slane %v1029_v21, 1  ;;  %v1036_v24 = vrot.slane %v1034_v22, 1  ;;  %1434 = vmatpush.bf16.msrb.mxu1 %v4551_v37  ;;  %v4601_v36 = vld [vmem:[#allocation12 + $0xb8] sm:$0xff]  ;;  %v4583_v37 = vld [vmem:[#allocation12 + $0x28] sm:$0xff] }
  0x70   : > { %v1087_v29 = vsel %vm1084_vm4, %v1085_v27, %v1086_v28  ;;  %1309 = vmatpush.bf16.msra.mxu3 %v4566_v45  ;;  %v4593_v38 = vld [vmem:[#allocation12 + $0x78] sm:$0xff]  ;;  %v4598_v45 = vld [vmem:[#allocation12 + $0xa0] sm:$0xff] }
  0x71   : > { %v1032_v25 = vor.u32 %v1031_v23, %v1027_v20  ;;  %1322 = vmatpush.bf16.msra.mxu0 %v4574_v47  ;;  %v4581_v43 = vld [vmem:[#allocation12 + $0x18] sm:$0xff]  ;;  %v4590_v47 = vld [vmem:[#allocation12 + $0x60] sm:$0xff] }
  0x73   : > { %v1037_v26 = vsel %vm1025_vm3, %v1032_v25, %v1036_v24  ;;  %1435 = vmatpush.bf16.msrb.mxu1 %v4550_v42  ;;  %v4599_v42 = vld [vmem:[#allocation12 + $0xa8] sm:$0xff] }
  0x74   : > { %3673 = vmatmul.msk.bf16.vlgmr.msra.gmra.mxu2 %vm1038_vm2, %v1037_v26  ;;  %1310 = vmatpush.bf16.msra.mxu3 %v4565_v49  ;;  %v4579_v49 = vld [vmem:[#allocation12 + $0x8] sm:$0xff] }
  0x75   : > { %1445 = vmatpush.bf16.msra.mxu2 %v4561_v31  ;;  %1323 = vmatpush.bf16.msra.mxu0 %v4573_v52  ;;  %v4578_v52 = vld [vmem:[#allocation12] sm:$0xff] }
  0x77   : > { %1436 = vmatpush.bf16.msrb.mxu1 %v4549_v46  ;;  %v4580_v46 = vld [vmem:[#allocation12 + $0x10] sm:$0xff] }
  0x78   : > { %1311 = vmatpush.bf16.msra.mxu3 %v4564_v54  ;;  %v4595_v54 = vld [vmem:[#allocation12 + $0x88] sm:$0xff] }
  0x79   : > { %1446 = vmatpush.bf16.msra.mxu2 %v4560_v35  ;;  %1324 = vmatpush.bf16.msra.mxu0 %v4572_v56  ;;  %v4584_v35 = vld [vmem:[#allocation12 + $0x30] sm:$0xff]  ;;  %v4594_v56 = vld [vmem:[#allocation12 + $0x80] sm:$0xff] }
  0x7b   : > { %1437 = vmatpush.bf16.msrb.mxu1 %v4548_v51  ;;  %v4596_v51 = vld [vmem:[#allocation12 + $0x90] sm:$0xff] }
  0x7c   : > { %1312 = vmatpush.bf16.msra.mxu3 %v4563_v58  ;;  %v4586_v58 = vld [vmem:[#allocation12 + $0x40] sm:$0xff] }
  0x7d   : > { %1447 = vmatpush.bf16.msra.mxu2 %v4559_v40  ;;  %1325 = vmatpush.bf16.msra.mxu0 %v4571_v61  ;;  %v4582_v40 = vld [vmem:[#allocation12 + $0x20] sm:$0xff] }
  0x7f   : > { %1438 = vmatpush.bf16.msrb.mxu1 %v4547_v55  ;;  %v4587_v55 = vld [vmem:[#allocation12 + $0x48] sm:$0xff] }
  0x80   : > { %1313 = vmatpush.bf16.msra.mxu3 %v4562_v0 }
  0x81   : > { %1448 = vmatpush.bf16.msra.mxu2 %v4558_v44  ;;  %1326 = vmatpush.bf16.msra.mxu0 %v4570_v3  ;;  %v4591_v44 = vld [vmem:[#allocation12 + $0x68] sm:$0xff] }
  0x83   : > { %1439 = vmatpush.bf16.msrb.mxu1 %v4546_v60 }
  0x84   : > { %3675 = vmatmul.msk.bf16.vlgmr.msrb.gmra.mxu2 %vm1038_vm2, %v1087_v29  ;;  %1565 = vmatpush.bf16.msrb.mxu3 %v4593_v38 }
  0x85   : > { %1449 = vmatpush.bf16.msra.mxu2 %v4557_v48  ;;  %1626 = vmatpush.bf16.msrb.mxu0 %v4585_v8  ;;  %v4597_v48 = vld [vmem:[#allocation12 + $0x98] sm:$0xff] }
  0x87   : > { %1706 = vmatpush.bf16.msra.mxu1 %v4601_v36  ;;  %v4615_v36 = vld [vmem:[#allocation15 + $0x28] sm:$0xff] }
  0x88   : > { %1566 = vmatpush.bf16.msrb.mxu3 %v4592_v41 }
  0x89   : > { %1450 = vmatpush.bf16.msra.mxu2 %v4556_v53  ;;  %1627 = vmatpush.bf16.msrb.mxu0 %v4584_v35  ;;  %v4588_v53 = vld [vmem:[#allocation12 + $0x50] sm:$0xff] }
  0x8b   : > { %1707 = vmatpush.bf16.msra.mxu1 %v4600_v39 }
  0x8c   : > { %1567 = vmatpush.bf16.msrb.mxu3 %v4591_v44 }
  0x8d   : > { %1451 = vmatpush.bf16.msra.mxu2 %v4555_v57  ;;  %1628 = vmatpush.bf16.msrb.mxu0 %v4583_v37  ;;  %v4614_v37 = vld [vmem:[#allocation15 + $0x20] sm:$0xff] }
  0x8f   : > { %1708 = vmatpush.bf16.msra.mxu1 %v4599_v42 }
  0x90   : > { %1568 = vmatpush.bf16.msrb.mxu3 %v4590_v47 }
  0x91   : > { %1452 = vmatpush.bf16.msra.mxu2 %v4554_v63  ;;  %1629 = vmatpush.bf16.msrb.mxu0 %v4582_v40 }
  0x93   : > { %1709 = vmatpush.bf16.msra.mxu1 %v4598_v45 }
  0x95   : > { %1630 = vmatpush.bf16.msrb.mxu0 %v4581_v43  ;;  %v4930_v43 = vld [vmem:[#allocation13] ss:$0 sm:$0xff] }
  0x97   : > { %1710 = vmatpush.bf16.msra.mxu1 %v4597_v48 }
  0x99   : > { %1631 = vmatpush.bf16.msrb.mxu0 %v4580_v46 }
  0x9b   : > { %1711 = vmatpush.bf16.msra.mxu1 %v4596_v51  ;;  %v4613_v51 = vld [vmem:[#allocation15 + $0x18] sm:$0xff] }
  0x9d   : > { %1632 = vmatpush.bf16.msrb.mxu0 %v4579_v49  ;;  %v4624_v49 = vld [vmem:[#allocation15 + $0x70] sm:$0xff] }
  0x9f   : > { %1712 = vmatpush.bf16.msra.mxu1 %v4595_v54  ;;  %v4612_v54 = vld [vmem:[#allocation15 + $0x10] sm:$0xff] }
  0xa1   : > { %1633 = vmatpush.bf16.msrb.mxu0 %v4578_v52  ;;  %v4623_v52 = vld [vmem:[#allocation15 + $0x68] sm:$0xff] }
  0xa3   : > { %1713 = vmatpush.bf16.msra.mxu1 %v4594_v56  ;;  %v4629_v56 = vld [vmem:[#allocation15 + $0x98] sm:$0xff] }
  0xea   : > { %v1077_v62 = vpop.f32.mrf.mxu1 }
  0xf2   : > { %v1079_v7 = vpop.f32.mrf.mxu1 }
  0xf7   : > { %v1058_v50 = vpop.f32.mrf.mxu2 }
  0xf8   : > { %v1078_v1 = vadd.f32 %v1077_v62, %v1058_v50  ;;  %v4589_v50 = vld [vmem:[#allocation12 + $0x58] sm:$0xff] }
  0xf9   : > { %1569 = vmatpush.bf16.msrb.mxu3 %v4589_v50  ;;  %v4609_v62 = vld [vmem:[%s5893_s5 + $0x38] sm:$0xff]  ;;  %v4631_v50 = vld [vmem:[#allocation15 + $0xa8] sm:$0xff] }
  0xfa   : > { %1795 = vmatpush.bf16.msrb.mxu2 %v4609_v62  ;;  %v4627_v62 = vld [vmem:[#allocation15 + $0x88] sm:$0xff] }
  0xfd   : > { %1570 = vmatpush.bf16.msrb.mxu3 %v4588_v53  ;;  %v4630_v53 = vld [vmem:[#allocation15 + $0xa0] sm:$0xff] }
  0xff   : > { %v1060_v59 = vpop.f32.mrf.mxu2 }
 0x100   : > { %v1080_v10 = vadd.f32 %v1079_v7, %v1060_v59 }
 0x101   : > { %1571 = vmatpush.bf16.msrb.mxu3 %v4587_v55  ;;  %v4622_v55 = vld [vmem:[#allocation15 + $0x60] sm:$0xff] }
 0x105   : > { %1572 = vmatpush.bf16.msrb.mxu3 %v4586_v58  ;;  %v4621_v58 = vld [vmem:[#allocation15 + $0x58] sm:$0xff] }
 0x107   : > { %v1103_v4 = vpop.f32.mrf.mxu2 }
 0x108   : > { %v1108_v5 = vadd.f32 %v1103_v4, %v1078_v1 }
 0x10a   : > { %v1114_v6 = vadd.f32 %v4928_v2, %v1108_v5 }
 0x10c   : > { %v1116_v9 = vmax.f32 %v1114_v6, 0.0 }
 0x10e   : > { %1118 = vst [vmem:[#allocation2 + $0x8] sm:$0xff] %v1116_v9 }
 0x10f   : > { %v1105_v11 = vpop.f32.mrf.mxu2 }
 0x110   : > { %v1109_v12 = vadd.f32 %v1105_v11, %v1080_v10 }
 0x112   : > { %v1115_v13 = vadd.f32 %v4928_v2, %v1109_v12  ;;  %v4929_v2 = vld [vmem:[#allocation10] ss:$0 sm:$0xff] }
 0x114   : > { %v1117_v14 = vmax.f32 %v1115_v13, 0.0 }
 0x115   : > { %v1120_v15 = vld [vmem:[#allocation2 + $0x7] sm:$0xff] }
 0x116   : > { %1119 = vst [vmem:[#allocation2 + $0x10] sm:$0xff] %v1117_v14  ;;  %v1123_v16 = vpack.c.bf16 %v1120_v15, %v1120_v15 }
 0x118   : > { %v1128_v21 = vunpack.c.l.b16 %v1123_v16 }
 0x11d   : > { %v1121_v17 = vld [vmem:[#allocation2 + $0xf] sm:$0xff]  ;;  %v1122_v18 = vld [vmem:[#allocation2 + $0x17] sm:$0x3] }
 0x11e   : > { %v1124_v19 = vpack.c.bf16 %v1121_v17, %v1121_v17  ;;  %v1125_v20 = vpack.c.bf16 %v1122_v18, %v1122_v18 }
 0x120   : > { %v1129_v22 = vunpack.c.l.b16 %v1124_v19  ;;  %v1134_v23 = vunpack.c.l.b16 %v1125_v20 }
 0x122   : > { %v1130_v24 = vpack.c.b16 %v1129_v22, %v1128_v21  ;;  %v1135_v25 = vpack.c.b16 %v1134_v23, %v1134_v23  ;;  %v4608_v23 = vld [vmem:[%s5893_s5 + $0x30] sm:$0xff] }
 0x123   : > { %1796 = vmatpush.bf16.msrb.mxu2 %v4608_v23  ;;  %v4639_v23 = vld [vmem:[%s5845_s11 + $0x28] sm:$0xff] }
 0x124   : > { %v3741_v26 = vpack.c.b16 %v1130_v24, %v1130_v24  ;;  %v1132_v27 = vunpack.i.h.s16 %v1130_v24  ;;  %v1136_v28 = vrot.slane %v1130_v24, 1  ;;  %v1137_v29 = vrot.slane %v1135_v25, 1  ;;  %v4607_v24 = vld [vmem:[%s5893_s5 + $0x28] sm:$0xff]  ;;  %v4606_v25 = vld [vmem:[%s5893_s5 + $0x20] sm:$0xff] }
 0x126   : > { %1440 = vmatmul.bf16.vlgmr.msrb.gmra.mxu1 %v3741_v26  ;;  %v1333_v30 = vpack.c.b16 %v1132_v27, %v1132_v27  ;;  %v1138_v31 = vsel %vm1084_vm4, %v1136_v28, %v1137_v29  ;;  %v4605_v26 = vld [vmem:[%s5893_s5 + $0x18] sm:$0xff]  ;;  %v4604_v27 = vld [vmem:[%s5893_s5 + $0x10] sm:$0xff]  ;;  %v4603_v28 = vld [vmem:[%s5893_s5 + $0x8] sm:$0xff] }
 0x127   : > { %v3676_v32 = vpack.c.b16 %v1138_v31, %v1138_v31  ;;  %v1140_v33 = vunpack.i.h.s16 %v1138_v31  ;;  %1797 = vmatpush.bf16.msrb.mxu2 %v4607_v24  ;;  %v4602_v29 = vld [vmem:[%s5893_s5] sm:$0xff]  ;;  %v4633_v31 = vld [vmem:[#allocation15 + $0xb8] sm:$0xff] }
 0x128   : > { %1453 = vmatmul.bf16.vlgmr.msra.gmra.mxu2 %v1333_v30  ;;  %v4617_v30 = vld [vmem:[#allocation15 + $0x38] sm:$0xff]  ;;  %2052 = vmatpush.bf16.msrb.mxu1 %v4633_v31  ;;  %v4638_v24 = vld [vmem:[%s5845_s11 + $0x20] sm:$0xff] }
 0x129   : > { %1314 = vmatmul.bf16.vlgmr.msra.gmra.mxu3 %v3676_v32  ;;  %v1207_v34 = vpack.c.b16 %v1140_v33, %v1140_v33  ;;  %v4625_v32 = vld [vmem:[#allocation15 + $0x78] sm:$0xff]  ;;  %v4616_v33 = vld [vmem:[#allocation15 + $0x30] sm:$0xff] }
 0x12a   : > { %1911 = vmatpush.bf16.msra.mxu3 %v4625_v32  ;;  %v4665_v31 = vld [vmem:[#allocation16 + $0xb8] sm:$0xff] }
 0x12b   : > { %1327 = vmatmul.bf16.vlgmr.msra.gmra.mxu0 %v1207_v34  ;;  %1798 = vmatpush.bf16.msrb.mxu2 %v4606_v25  ;;  %v4632_v34 = vld [vmem:[#allocation15 + $0xb0] sm:$0xff]  ;;  %v4637_v25 = vld [vmem:[%s5845_s11 + $0x18] sm:$0xff] }
 0x12c   : > { %1972 = vmatpush.bf16.msra.mxu0 %v4617_v30  ;;  %2053 = vmatpush.bf16.msrb.mxu1 %v4632_v34  ;;  %v4657_v30 = vld [vmem:[#allocation16 + $0x78] sm:$0xff]  ;;  %v4656_v34 = vld [vmem:[#allocation16 + $0x70] sm:$0xff] }
 0x12d   : > { %v4673_v32 = vld [vmem:[#allocation16 + $0xf8] sm:$0xff] }
 0x12e   : > { %1912 = vmatpush.bf16.msra.mxu3 %v4624_v49 }
 0x12f   : > { %1799 = vmatpush.bf16.msrb.mxu2 %v4605_v26  ;;  %v4636_v26 = vld [vmem:[%s5845_s11 + $0x10] sm:$0xff] }
 0x130   : > { %1973 = vmatpush.bf16.msra.mxu0 %v4616_v33  ;;  %2054 = vmatpush.bf16.msrb.mxu1 %v4631_v50  ;;  %v4648_v33 = vld [vmem:[#allocation16 + $0x30] sm:$0xff] }
 0x132   : > { %1913 = vmatpush.bf16.msra.mxu3 %v4623_v52  ;;  %v4663_v52 = vld [vmem:[#allocation16 + $0xa8] sm:$0xff] }
 0x133   : > { %1800 = vmatpush.bf16.msrb.mxu2 %v4604_v27  ;;  %v4635_v27 = vld [vmem:[%s5845_s11 + $0x8] sm:$0xff] }
 0x134   : > { %1974 = vmatpush.bf16.msra.mxu0 %v4615_v36  ;;  %2055 = vmatpush.bf16.msrb.mxu1 %v4630_v53  ;;  %v4672_v36 = vld [vmem:[#allocation16 + $0xf0] sm:$0xff]  ;;  %v4654_v53 = vld [vmem:[#allocation16 + $0x60] sm:$0xff] }
 0x136   : > { %1914 = vmatpush.bf16.msra.mxu3 %v4622_v55  ;;  %v4645_v55 = vld [vmem:[#allocation16 + $0x18] sm:$0xff] }
 0x137   : > { %1801 = vmatpush.bf16.msrb.mxu2 %v4603_v28  ;;  %v4634_v28 = vld [vmem:[%s5845_s11] sm:$0xff] }
 0x138   : > { %1975 = vmatpush.bf16.msra.mxu0 %v4614_v37  ;;  %2056 = vmatpush.bf16.msrb.mxu1 %v4629_v56  ;;  %v4662_v56 = vld [vmem:[#allocation16 + $0xa0] sm:$0xff] }
 0x13a   : > { %1915 = vmatpush.bf16.msra.mxu3 %v4621_v58  ;;  %v4670_v58 = vld [vmem:[#allocation16 + $0xe0] sm:$0xff] }
 0x13b   : > { %1802 = vmatpush.bf16.msrb.mxu2 %v4602_v29  ;;  %v4649_v29 = vld [vmem:[#allocation16 + $0x38] sm:$0xff] }
 0x13c   : > { %1976 = vmatpush.bf16.msra.mxu0 %v4613_v51 }
 0x140   : > { %1977 = vmatpush.bf16.msra.mxu0 %v4612_v54  ;;  %v4671_v54 = vld [vmem:[#allocation16 + $0xe8] sm:$0xff] }
 0x1a3   : > { %v1441_v57 = vpop.f32.mrf.mxu1 }
 0x1a8   : > { %v1328_v59 = vpop.f32.mrf.mxu0 }
 0x1ab   : > { %v1443_v60 = vpop.f32.mrf.mxu1  ;;  %v1454_v61 = vpop.f32.mrf.mxu2 }
 0x1ac   : > { %v1315_v63 = vpop.f32.mrf.mxu3  ;;  %v4610_v60 = vld [vmem:[#allocation15] sm:$0xff] }
 0x1ad   : > { %v1329_v0 = vadd.f32 %v1328_v59, %v1315_v63  ;;  %v4628_v59 = vld [vmem:[#allocation15 + $0x90] sm:$0xff]  ;;  %v4619_v63 = vld [vmem:[#allocation15 + $0x48] sm:$0xff] }
 0x1ae   : > { %2057 = vmatpush.bf16.msrb.mxu1 %v4628_v59  ;;  %v4644_v59 = vld [vmem:[#allocation16 + $0x10] sm:$0xff] }
 0x1af   : > { %v1442_v1 = vadd.f32 %v1441_v57, %v1329_v0  ;;  %v4611_v57 = vld [vmem:[#allocation15 + $0x8] sm:$0xff]  ;;  %v4626_v0 = vld [vmem:[#allocation15 + $0x80] sm:$0xff] }
 0x1b0   : > { %v1330_v3 = vpop.f32.mrf.mxu0  ;;  %1978 = vmatpush.bf16.msra.mxu0 %v4611_v57  ;;  %v4653_v57 = vld [vmem:[#allocation16 + $0x58] sm:$0xff] }
 0x1b1   : > { %v1455_v4 = vadd.f32 %v1454_v61, %v1442_v1  ;;  %v4620_v61 = vld [vmem:[#allocation15 + $0x50] sm:$0xff]  ;;  %v4618_v1 = vld [vmem:[#allocation15 + $0x40] sm:$0xff] }
 0x1b2   : > { %1916 = vmatpush.bf16.msra.mxu3 %v4620_v61  ;;  %2058 = vmatpush.bf16.msrb.mxu1 %v4627_v62  ;;  %v4931_v3 = vld [vmem:[%s5894_s4] ss:$0 sm:$0xff]  ;;  %v4652_v61 = vld [vmem:[#allocation16 + $0x50] sm:$0xff]  ;;  %v4669_v62 = vld [vmem:[#allocation16 + $0xd8] sm:$0xff] }
 0x1b3   : > { %v5753_v5 = vadd.f32 %v4929_v2, %v1455_v4  ;;  %v1456_v6 = vpop.f32.mrf.mxu2  ;;  %v4641_v2 = vld [vmem:[%s5845_s11 + $0x38] sm:$0xff] }
 0x1b4   : > { %v1317_v7 = vpop.f32.mrf.mxu3  ;;  %1979 = vmatpush.bf16.msra.mxu0 %v4610_v60  ;;  %2141 = vmatpush.bf16.msra.mxu2 %v4641_v2  ;;  %v4661_v60 = vld [vmem:[#allocation16 + $0x98] sm:$0xff]  ;;  %v4668_v2 = vld [vmem:[#allocation16 + $0xd0] sm:$0xff] }
 0x1b5   : > { %1463 = vst [vmem:[#allocation3 + $0x8] sm:$0xff] %v5753_v5 }
 0x1b6   : > { %1917 = vmatpush.bf16.msra.mxu3 %v4619_v63  ;;  %2059 = vmatpush.bf16.msrb.mxu1 %v4626_v0  ;;  %v4643_v63 = vld [vmem:[#allocation16 + $0x8] sm:$0xff]  ;;  %v4660_v0 = vld [vmem:[#allocation16 + $0x90] sm:$0xff] }
 0x1ba   : > { %1918 = vmatpush.bf16.msra.mxu3 %v4618_v1  ;;  %v4651_v1 = vld [vmem:[#allocation16 + $0x48] sm:$0xff] }
 0x1bc   : > { %v1464_v8 = vld [vmem:[#allocation3 + $0x5] sm:$0xff]  ;;  %v1465_v9 = vld [vmem:[#allocation3 + $0xd] sm:$0x3f] }
 0x1bd   : > { %v1466_v10 = vmax.f32 %v1464_v8, 0.0  ;;  %v1467_v11 = vmax.f32 %v1465_v9, 0.0 }
 0x1bf   : > { %v1468_v12 = vpack.c.bf16 %v1466_v10, %v1466_v10  ;;  %v1469_v13 = vpack.c.bf16 %v1467_v11, %v1467_v11 }
 0x1c1   : > { %v1505_v14 = vunpack.c.l.b16 %v1468_v12  ;;  %v1506_v15 = vunpack.c.l.b16 %v1469_v13  ;;  %1634 = vmatmul.bf16.vlgmr.msrb.gmra.mxu0 %v1468_v12 }
 0x1c2   : > { %2349 = vmatpush.bf16.msrb.mxu0 %v4673_v32  ;;  %v4689_v32 = vld [vmem:[#allocation19 + $0x78] sm:$0xff] }
 0x1c3   : > { %v1507_v16 = vpack.c.b16 %v1506_v15, %v1505_v14 }
 0x1c5   : > { %v1656_v17 = vrot.slane %v1507_v16, 3  ;;  %v1509_v18 = vshrl.u32 %v1507_v16, 16  ;;  %v1512_v19 = vshll.u32 %v1507_v16, 16 }
 0x1c6   : > { %2350 = vmatpush.bf16.msrb.mxu0 %v4672_v36  ;;  %v4695_v36 = vld [vmem:[#allocation19 + $0xa8] sm:$0xff] }
 0x1c7   : > { %1714 = vmatmul.bf16.vlgmr.msra.gmra.mxu1 %v1656_v17  ;;  %v1511_v20 = vrot.slane %v1509_v18, 1  ;;  %v1514_v21 = vrot.slane %v1512_v19, 2 }
 0x1c8   : > { %2462 = vmatpush.bf16.msra.mxu1 %v4649_v29  ;;  %v4680_v29 = vld [vmem:[#allocation19 + $0x30] sm:$0xff] }
 0x1c9   : > { %v1515_v22 = vor.u32 %v1514_v21, %v1511_v20 }
 0x1ca   : > { %2351 = vmatpush.bf16.msrb.mxu0 %v4671_v54 }
 0x1cb   : > { %1573 = vmatmul.bf16.vlgmr.msrb.gmra.mxu3 %v1515_v22  ;;  %v4640_v22 = vld [vmem:[%s5845_s11 + $0x30] sm:$0xff] }
 0x1cc   : > { %2142 = vmatpush.bf16.msra.mxu2 %v4640_v22  ;;  %2336 = vmatpush.bf16.msrb.mxu3 %v4665_v31  ;;  %v4679_v31 = vld [vmem:[#allocation19 + $0x28] sm:$0xff] }
 0x1cd   : > { %2463 = vmatpush.bf16.msra.mxu1 %v4648_v33  ;;  %v4696_v33 = vld [vmem:[#allocation19 + $0xb0] sm:$0xff] }
 0x1ce   : > { %2352 = vmatpush.bf16.msrb.mxu0 %v4670_v58 }
 0x1d0   : > { %2143 = vmatpush.bf16.msra.mxu2 %v4639_v23 }
 0x1d2   : > { %2353 = vmatpush.bf16.msrb.mxu0 %v4669_v62 }
 0x1d4   : > { %2144 = vmatpush.bf16.msra.mxu2 %v4638_v24 }
 0x1d6   : > { %2354 = vmatpush.bf16.msrb.mxu0 %v4668_v2  ;;  %v2495_v2 = vld [vmem:[#allocation4 + $0xd] sm:$0x3] }
 0x1d8   : > { %2145 = vmatpush.bf16.msra.mxu2 %v4637_v25 }
 0x1dc   : > { %2146 = vmatpush.bf16.msra.mxu2 %v4636_v26 }
 0x1e0   : > { %2147 = vmatpush.bf16.msra.mxu2 %v4635_v27 }
 0x1e4   : > { %2148 = vmatpush.bf16.msra.mxu2 %v4634_v28 }
 0x23e   : > { %v1635_v35 = vpop.f32.mrf.mxu0 }
 0x244   : > { %v1715_v38 = vpop.f32.mrf.mxu1 }
 0x246   : > { %v1637_v39 = vpop.f32.mrf.mxu0 }
 0x247   : > { %v4655_v39 = vld [vmem:[#allocation16 + $0x68] sm:$0xff] }
 0x24c   : > { %v1717_v40 = vpop.f32.mrf.mxu1 }
 0x24d   : > { %v4646_v40 = vld [vmem:[#allocation16 + $0x20] sm:$0xff] }
 0x24e   : > { %v1574_v41 = vpop.f32.mrf.mxu3 }
 0x24f   : > { %v1636_v42 = vadd.f32 %v1635_v35, %v1574_v41  ;;  %v4664_v35 = vld [vmem:[#allocation16 + $0xb0] sm:$0xff] }
 0x250   : > { %2337 = vmatpush.bf16.msrb.mxu3 %v4664_v35  ;;  %v4688_v35 = vld [vmem:[#allocation19 + $0x70] sm:$0xff] }
 0x251   : > { %v1719_v44 = vadd.f32 %v1715_v38, %v1636_v42  ;;  %v4647_v38 = vld [vmem:[#allocation16 + $0x28] sm:$0xff] }
 0x252   : > { %2464 = vmatpush.bf16.msra.mxu1 %v4647_v38  ;;  %v4687_v38 = vld [vmem:[#allocation19 + $0x68] sm:$0xff] }
 0x253   : > { %v1724_v45 = vadd.f32 %v4930_v43, %v1719_v44 }
 0x254   : > { %2338 = vmatpush.bf16.msrb.mxu3 %v4663_v52  ;;  %v4682_v52 = vld [vmem:[#allocation19 + $0x40] sm:$0xff] }
 0x255   : > { %v1725_v46 = vmax.f32 %v1724_v45, 0.0 }
 0x256   : > { %v1576_v47 = vpop.f32.mrf.mxu3  ;;  %2465 = vmatpush.bf16.msra.mxu1 %v4646_v40  ;;  %v4676_v40 = vld [vmem:[#allocation19 + $0x10] sm:$0xff] }
 0x257   : > { %v1726_v48 = vpack.c.bf16 %v1725_v46, %v1725_v46  ;;  %v4932_v46 = vld [vmem:[%s5844_s10] ss:$0 sm:$0xff] }
 0x258   : > { %2339 = vmatpush.bf16.msrb.mxu3 %v4662_v56  ;;  %v4705_v56 = vld [vmem:[#allocation21 + $0x38] sm:$0xff] }
 0x259   : > { %1803 = vmatmul.bf16.vlgmr.msrb.gmra.mxu2 %v1726_v48 }
 0x25a   : > { %2475 = vmatpush.bf16.msrb.mxu2 %v4657_v30  ;;  %2466 = vmatpush.bf16.msra.mxu1 %v4645_v55  ;;  %v4697_v30 = vld [vmem:[#allocation19 + $0xb8] sm:$0xff] }
 0x25c   : > { %2340 = vmatpush.bf16.msrb.mxu3 %v4661_v60  ;;  %v4934_v60 = vld [vmem:[#allocation18] ss:$0 sm:$0xff] }
 0x25e   : > { %2476 = vmatpush.bf16.msrb.mxu2 %v4656_v34  ;;  %2467 = vmatpush.bf16.msra.mxu1 %v4644_v59  ;;  %v4678_v34 = vld [vmem:[#allocation19 + $0x20] sm:$0xff] }
 0x260   : > { %2341 = vmatpush.bf16.msrb.mxu3 %v4660_v0 }
 0x262   : > { %2477 = vmatpush.bf16.msrb.mxu2 %v4655_v39  ;;  %2468 = vmatpush.bf16.msra.mxu1 %v4643_v63  ;;  %v4694_v39 = vld [vmem:[#allocation19 + $0xa0] sm:$0xff] }
 0x266   : > { %2478 = vmatpush.bf16.msrb.mxu2 %v4654_v53 }
 0x26a   : > { %2479 = vmatpush.bf16.msrb.mxu2 %v4653_v57 }
 0x26e   : > { %2480 = vmatpush.bf16.msrb.mxu2 %v4652_v61 }
 0x272   : > { %2481 = vmatpush.bf16.msrb.mxu2 %v4651_v1 }
 0x2dc   : > { %v1804_v4 = vpop.f32.mrf.mxu2 }
 0x2dd   : > { %v1805_v6 = vadd.f32 %v4931_v3, %v1804_v4  ;;  %v4642_v3 = vld [vmem:[#allocation16] sm:$0xff]  ;;  %v4659_v4 = vld [vmem:[#allocation16 + $0x88] sm:$0xff] }
 0x2de   : > { %2469 = vmatpush.bf16.msra.mxu1 %v4642_v3  ;;  %2342 = vmatpush.bf16.msrb.mxu3 %v4659_v4  ;;  %v2497_v3 = vmax.f32 %v2495_v2, 0.0 }
 0x2df   : > { %v5784_v7 = vadd.f32 %v1805_v6, %v5753_v5  ;;  %v4650_v6 = vld [vmem:[#allocation16 + $0x40] sm:$0xff] }
 0x2e0   : > { %2482 = vmatpush.bf16.msrb.mxu2 %v4650_v6  ;;  %v2499_v4 = vpack.c.bf16 %v2497_v3, %v2497_v3 }
 0x2e1   : > { %1810 = vst [vmem:[#allocation3 + $0x8] sm:$0xff] %v5784_v7 }
 0x2e4   : > { %v1806_v8 = vpop.f32.mrf.mxu2 }
 0x2e5   : > { %v4667_v8 = vld [vmem:[#allocation16 + $0xc8] sm:$0xff] }
 0x2e6   : > { %2355 = vmatpush.bf16.msrb.mxu0 %v4667_v8 }
 0x2e8   : > { %v1811_v9 = vld [vmem:[#allocation3 + $0x7] sm:$0xff]  ;;  %v1812_v10 = vld [vmem:[#allocation3 + $0xf] sm:$0x3] }
 0x2e9   : > { %v1813_v11 = vmax.f32 %v1811_v9, 0.0  ;;  %v1814_v12 = vmax.f32 %v1812_v10, 0.0  ;;  %v4658_v9 = vld [vmem:[#allocation16 + $0x80] sm:$0xff] }
 0x2ea   : > { %v4666_v10 = vld [vmem:[#allocation16 + $0xc0] sm:$0xff]  ;;  %2343 = vmatpush.bf16.msrb.mxu3 %v4658_v9 }
 0x2eb   : > { %v1815_v13 = vpack.c.bf16 %v1813_v11, %v1813_v11  ;;  %v1816_v14 = vpack.c.bf16 %v1814_v12, %v1814_v12  ;;  %2356 = vmatpush.bf16.msrb.mxu0 %v4666_v10  ;;  %v4933_v11 = vld [vmem:[%s5846_s12] ss:$0 sm:$0xff]  ;;  %v2685_v10 = vunpack.c.l.b16 %v2499_v4 }
 0x2ed   : > { %v1852_v15 = vunpack.c.l.b16 %v1815_v13  ;;  %v1853_v16 = vunpack.c.l.b16 %v1816_v14  ;;  %1980 = vmatmul.bf16.vlgmr.msra.gmra.mxu0 %v1815_v13 }
 0x2ef   : > { %v1854_v17 = vpack.c.b16 %v1853_v16, %v1852_v15 }
 0x2f1   : > { %v2002_v18 = vrot.slane %v1854_v17, 1  ;;  %v1858_v19 = vshll.u32 %v1854_v17, 16  ;;  %v1856_v20 = vshrl.u32 %v1854_v17, 16 }
 0x2f3   : > { %2060 = vmatmul.bf16.vlgmr.msrb.gmra.mxu1 %v2002_v18  ;;  %v1860_v21 = vrot.slane %v1858_v19, 1 }
 0x2f4   : > { %2737 = vmatpush.bf16.msrb.mxu1 %v4697_v30 }
 0x2f5   : > { %v1861_v5 = vor.u32 %v1860_v21, %v1856_v20 }
 0x2f7   : > { %1919 = vmatmul.bf16.vlgmr.msra.gmra.mxu3 %v1861_v5 }
 0x2f8   : > { %2593 = vmatpush.bf16.msra.mxu3 %v4689_v32  ;;  %2738 = vmatpush.bf16.msrb.mxu1 %v4696_v33  ;;  %v4710_v32 = vld [vmem:[#allocation22 + $0x20] sm:$0xff] }
 0x2fc   : > { %2594 = vmatpush.bf16.msra.mxu3 %v4688_v35  ;;  %2739 = vmatpush.bf16.msrb.mxu1 %v4695_v36 }
 0x300   : > { %2595 = vmatpush.bf16.msra.mxu3 %v4687_v38  ;;  %2740 = vmatpush.bf16.msrb.mxu1 %v4694_v39  ;;  %v4935_v38 = vld [vmem:[%s5850_s16] ss:$0 sm:$0xff] }
 0x36a   : > { %v1981_v37 = vpop.f32.mrf.mxu0 }
 0x370   : > { %v2061_v41 = vpop.f32.mrf.mxu1 }
 0x372   : > { %v1983_v42 = vpop.f32.mrf.mxu0 }
 0x373   : > { %v4693_v42 = vld [vmem:[#allocation19 + $0x98] sm:$0xff] }
 0x374   : > { %2741 = vmatpush.bf16.msrb.mxu1 %v4693_v42 }
 0x378   : > { %v2063_v43 = vpop.f32.mrf.mxu1 }
 0x379   : > { %v4675_v43 = vld [vmem:[#allocation19 + $0x8] sm:$0xff] }
 0x37a   : > { %v1920_v44 = vpop.f32.mrf.mxu3 }
 0x37b   : > { %v1982_v45 = vadd.f32 %v1981_v37, %v1920_v44  ;;  %v4677_v37 = vld [vmem:[#allocation19 + $0x18] sm:$0xff] }
 0x37c   : > { %v4685_v44 = vld [vmem:[#allocation19 + $0x58] sm:$0xff] }
 0x37d   : > { %v2065_v47 = vadd.f32 %v2061_v41, %v1982_v45  ;;  %v4686_v41 = vld [vmem:[#allocation19 + $0x60] sm:$0xff]  ;;  %v4692_v45 = vld [vmem:[#allocation19 + $0x90] sm:$0xff] }
 0x37e   : > { %2596 = vmatpush.bf16.msra.mxu3 %v4686_v41  ;;  %2742 = vmatpush.bf16.msrb.mxu1 %v4692_v45  ;;  %v4727_v45 = vld [vmem:[#allocation22 + $0xa8] sm:$0xff] }
 0x37f   : > { %v2070_v48 = vadd.f32 %v4932_v46, %v2065_v47  ;;  %v4674_v46 = vld [vmem:[#allocation19] sm:$0xff]  ;;  %v4684_v47 = vld [vmem:[#allocation19 + $0x50] sm:$0xff] }
 0x381   : > { %v2071_v49 = vmax.f32 %v2070_v48, 0.0  ;;  %v4691_v48 = vld [vmem:[#allocation19 + $0x88] sm:$0xff] }
 0x382   : > { %v1922_v50 = vpop.f32.mrf.mxu3  ;;  %2597 = vmatpush.bf16.msra.mxu3 %v4685_v44  ;;  %2743 = vmatpush.bf16.msrb.mxu1 %v4691_v48  ;;  %v4720_v44 = vld [vmem:[#allocation22 + $0x70] sm:$0xff]  ;;  %v4726_v48 = vld [vmem:[#allocation22 + $0xa0] sm:$0xff] }
 0x383   : > { %v2072_v51 = vpack.c.bf16 %v2071_v49, %v2071_v49  ;;  %v4683_v50 = vld [vmem:[#allocation19 + $0x48] sm:$0xff] }
 0x385   : > { %2149 = vmatmul.bf16.vlgmr.msra.gmra.mxu2 %v2072_v51  ;;  %v4690_v51 = vld [vmem:[#allocation19 + $0x80] sm:$0xff] }
 0x386   : > { %2598 = vmatpush.bf16.msra.mxu3 %v4684_v47  ;;  %2744 = vmatpush.bf16.msrb.mxu1 %v4690_v51  ;;  %v4719_v47 = vld [vmem:[#allocation22 + $0x68] sm:$0xff]  ;;  %v4725_v51 = vld [vmem:[#allocation22 + $0x98] sm:$0xff] }
 0x387   : > { %2826 = vmatpush.bf16.msra.mxu2 %v4705_v56  ;;  %v4716_v56 = vld [vmem:[#allocation22 + $0x50] sm:$0xff] }
 0x38a   : > { %2599 = vmatpush.bf16.msra.mxu3 %v4683_v50  ;;  %v4718_v50 = vld [vmem:[#allocation22 + $0x60] sm:$0xff] }
 0x38e   : > { %2600 = vmatpush.bf16.msra.mxu3 %v4682_v52  ;;  %v4707_v52 = vld [vmem:[#allocation22 + $0x8] sm:$0xff] }
 0x408   : > { %v2150_v12 = vpop.f32.mrf.mxu2 }
 0x409   : > { %v2151_v13 = vadd.f32 %v4933_v11, %v2150_v12 }
 0x40b   : > { %v2155_v14 = vadd.f32 %v2151_v13, %v5784_v7  ;;  %v4681_v7 = vld [vmem:[#allocation19 + $0x38] sm:$0xff] }
 0x40c   : > { %2654 = vmatpush.bf16.msra.mxu0 %v4681_v7  ;;  %v4712_v7 = vld [vmem:[#allocation22 + $0x30] sm:$0xff] }
 0x40d   : > { %2156 = vst [vmem:[#allocation3 + $0x8] sm:$0xff] %v2155_v14 }
 0x410   : > { %v2152_v15 = vpop.f32.mrf.mxu2  ;;  %2655 = vmatpush.bf16.msra.mxu0 %v4680_v29  ;;  %v4728_v29 = vld [vmem:[#allocation22 + $0xb0] sm:$0xff] }
 0x414   : > { %v2157_v16 = vld [vmem:[#allocation3 + $0x7] sm:$0xff]  ;;  %v2158_v17 = vld [vmem:[#allocation3 + $0xf] sm:$0x3]  ;;  %2656 = vmatpush.bf16.msra.mxu0 %v4679_v31 }
 0x415   : > { %v2159_v18 = vpack.c.bf16 %v2157_v16, %v2157_v16  ;;  %v2160_v19 = vpack.c.bf16 %v2158_v17, %v2158_v17  ;;  %v4711_v31 = vld [vmem:[#allocation22 + $0x28] sm:$0xff] }
 0x417   : > { %v4127_v20 = vpack.c.b16 %v2159_v18, %v2159_v18  ;;  %v2163_v21 = vunpack.i.h.s16 %v2159_v18  ;;  %v2165_v5 = vunpack.c.l.b16 %v2159_v18  ;;  %v2166_v22 = vunpack.c.l.b16 %v2160_v19 }
 0x418   : > { %2657 = vmatpush.bf16.msra.mxu0 %v4678_v34 }
 0x419   : > { %2470 = vmatmul.bf16.vlgmr.msra.gmra.mxu1 %v4127_v20  ;;  %v2363_v23 = vpack.c.b16 %v2163_v21, %v2163_v21  ;;  %v2167_v24 = vpack.c.b16 %v2166_v22, %v2165_v5  ;;  %v4704_v20 = vld [vmem:[#allocation21 + $0x30] sm:$0xff]  ;;  %v4703_v21 = vld [vmem:[#allocation21 + $0x28] sm:$0xff]  ;;  %v4702_v5 = vld [vmem:[#allocation21 + $0x20] sm:$0xff] }
 0x41a   : > { %2827 = vmatpush.bf16.msra.mxu2 %v4704_v20  ;;  %v4701_v22 = vld [vmem:[#allocation21 + $0x18] sm:$0xff]  ;;  %v4732_v20 = vld [vmem:[#allocation24 + $0x10] sm:$0xff] }
 0x41b   : > { %2483 = vmatmul.bf16.vlgmr.msrb.gmra.mxu2 %v2363_v23  ;;  %v2168_v25 = vrot.slane %v2167_v24, 1  ;;  %v4700_v23 = vld [vmem:[#allocation21 + $0x10] sm:$0xff]  ;;  %v4699_v24 = vld [vmem:[#allocation21 + $0x8] sm:$0xff] }
 0x41c   : > { %2658 = vmatpush.bf16.msra.mxu0 %v4677_v37 }
 0x41d   : > { %v4062_v26 = vpack.c.b16 %v2168_v25, %v2168_v25  ;;  %v2170_v27 = vunpack.i.h.s16 %v2168_v25  ;;  %v4698_v25 = vld [vmem:[#allocation21] sm:$0xff] }
 0x41e   : > { %2828 = vmatpush.bf16.msra.mxu2 %v4703_v21  ;;  %v4731_v21 = vld [vmem:[#allocation24 + $0x8] sm:$0xff] }
 0x41f   : > { %2344 = vmatmul.bf16.vlgmr.msrb.gmra.mxu3 %v4062_v26  ;;  %v2237_v28 = vpack.c.b16 %v2170_v27, %v2170_v27  ;;  %v4713_v26 = vld [vmem:[#allocation22 + $0x38] sm:$0xff] }
 0x420   : > { %2659 = vmatpush.bf16.msra.mxu0 %v4676_v40  ;;  %v4729_v27 = vld [vmem:[#allocation22 + $0xb8] sm:$0xff] }
 0x421   : > { %2357 = vmatmul.bf16.vlgmr.msrb.gmra.mxu0 %v2237_v28  ;;  %v4721_v28 = vld [vmem:[#allocation22 + $0x78] sm:$0xff]  ;;  %3078 = vmatpush.bf16.msra.mxu1 %v4729_v27  ;;  %v4752_v27 = vld [vmem:[#allocation25 + $0x70] sm:$0xff] }
 0x422   : > { %2829 = vmatpush.bf16.msra.mxu2 %v4702_v5  ;;  %2937 = vmatpush.bf16.msrb.mxu3 %v4721_v28  ;;  %v4730_v5 = vld [vmem:[#allocation24] sm:$0xff] }
 0x424   : > { %2660 = vmatpush.bf16.msra.mxu0 %v4675_v43 }
 0x425   : > { %3079 = vmatpush.bf16.msra.mxu1 %v4728_v29  ;;  %v4759_v29 = vld [vmem:[#allocation25 + $0xa8] sm:$0xff] }
 0x426   : > { %2830 = vmatpush.bf16.msra.mxu2 %v4701_v22  ;;  %2938 = vmatpush.bf16.msrb.mxu3 %v4720_v44  ;;  %v4745_v22 = vld [vmem:[#allocation25 + $0x38] sm:$0xff]  ;;  %v4758_v44 = vld [vmem:[#allocation25 + $0xa0] sm:$0xff] }
 0x428   : > { %2661 = vmatpush.bf16.msra.mxu0 %v4674_v46  ;;  %v4709_v46 = vld [vmem:[#allocation22 + $0x18] sm:$0xff] }
 0x429   : > { %3080 = vmatpush.bf16.msra.mxu1 %v4727_v45  ;;  %v4740_v45 = vld [vmem:[#allocation25 + $0x10] sm:$0xff] }
 0x42a   : > { %2831 = vmatpush.bf16.msra.mxu2 %v4700_v23  ;;  %2939 = vmatpush.bf16.msrb.mxu3 %v4719_v47  ;;  %v4761_v23 = vld [vmem:[#allocation25 + $0xb8] sm:$0xff] }
 0x42b   : > { %v4757_v47 = vld [vmem:[#allocation25 + $0x98] sm:$0xff] }
 0x42c   : > { %2998 = vmatpush.bf16.msrb.mxu0 %v4713_v26  ;;  %v4760_v26 = vld [vmem:[#allocation25 + $0xb0] sm:$0xff] }
 0x42d   : > { %3081 = vmatpush.bf16.msra.mxu1 %v4726_v48  ;;  %v4739_v48 = vld [vmem:[#allocation25 + $0x8] sm:$0xff] }
 0x42e   : > { %2832 = vmatpush.bf16.msra.mxu2 %v4699_v24  ;;  %2940 = vmatpush.bf16.msrb.mxu3 %v4718_v50  ;;  %v4753_v24 = vld [vmem:[#allocation25 + $0x78] sm:$0xff]  ;;  %v4756_v50 = vld [vmem:[#allocation25 + $0x90] sm:$0xff] }
 0x430   : > { %2999 = vmatpush.bf16.msrb.mxu0 %v4712_v7  ;;  %v4743_v7 = vld [vmem:[#allocation25 + $0x28] sm:$0xff] }
 0x431   : > { %3082 = vmatpush.bf16.msra.mxu1 %v4725_v51  ;;  %v4738_v51 = vld [vmem:[#allocation25] sm:$0xff] }
 0x432   : > { %2833 = vmatpush.bf16.msra.mxu2 %v4698_v25  ;;  %v4744_v25 = vld [vmem:[#allocation25 + $0x30] sm:$0xff] }
 0x434   : > { %3000 = vmatpush.bf16.msrb.mxu0 %v4711_v31 }
 0x438   : > { %3001 = vmatpush.bf16.msrb.mxu0 %v4710_v32 }
 0x43c   : > { %3002 = vmatpush.bf16.msrb.mxu0 %v4709_v46  ;;  %v4750_v46 = vld [vmem:[#allocation25 + $0x60] sm:$0xff] }
 0x496   : > { %v2471_v49 = vpop.f32.mrf.mxu1 }
 0x49e   : > { %v2358_v53 = vpop.f32.mrf.mxu0  ;;  %v2473_v54 = vpop.f32.mrf.mxu1 }
 0x49f   : > { %v2484_v55 = vpop.f32.mrf.mxu2  ;;  %v4724_v54 = vld [vmem:[#allocation22 + $0x90] sm:$0xff] }
 0x4a0   : > { %3083 = vmatpush.bf16.msra.mxu1 %v4724_v54  ;;  %v4747_v54 = vld [vmem:[#allocation25 + $0x48] sm:$0xff] }
 0x4a2   : > { %v2345_v57 = vpop.f32.mrf.mxu3 }
 0x4a3   : > { %v2359_v58 = vadd.f32 %v2358_v53, %v2345_v57  ;;  %v4717_v53 = vld [vmem:[#allocation22 + $0x58] sm:$0xff]  ;;  %v4723_v57 = vld [vmem:[#allocation22 + $0x88] sm:$0xff] }
 0x4a4   : > { %2941 = vmatpush.bf16.msrb.mxu3 %v4717_v53  ;;  %3084 = vmatpush.bf16.msra.mxu1 %v4723_v57  ;;  %v4755_v53 = vld [vmem:[#allocation25 + $0x88] sm:$0xff]  ;;  %v4938_v57 = vld [vmem:[%s5895_s23] ss:$0 sm:$0xff] }
 0x4a5   : > { %v2472_v59 = vadd.f32 %v2471_v49, %v2359_v58  ;;  %v4708_v49 = vld [vmem:[#allocation22 + $0x10] sm:$0xff]  ;;  %v4715_v58 = vld [vmem:[#allocation22 + $0x48] sm:$0xff] }
 0x4a6   : > { %v2360_v61 = vpop.f32.mrf.mxu0  ;;  %3003 = vmatpush.bf16.msrb.mxu0 %v4708_v49  ;;  %v4749_v49 = vld [vmem:[#allocation25 + $0x58] sm:$0xff] }
 0x4a7   : > { %v2485_v62 = vadd.f32 %v2484_v55, %v2472_v59  ;;  %v2486_v63 = vpop.f32.mrf.mxu2  ;;  %v4706_v55 = vld [vmem:[#allocation22] sm:$0xff]  ;;  %v4737_v61 = vld [vmem:[#allocation24 + $0x38] sm:$0xff] }
 0x4a8   : > { %2942 = vmatpush.bf16.msrb.mxu3 %v4716_v56  ;;  %v4722_v59 = vld [vmem:[#allocation22 + $0x80] sm:$0xff]  ;;  %3167 = vmatpush.bf16.msrb.mxu2 %v4737_v61 }
 0x4a9   : > { %v2492_v0 = vadd.f32 %v4934_v60, %v2485_v62  ;;  %3085 = vmatpush.bf16.msra.mxu1 %v4722_v59  ;;  %v4714_v60 = vld [vmem:[#allocation22 + $0x40] sm:$0xff] }
 0x4aa   : > { %v2347_v1 = vpop.f32.mrf.mxu3  ;;  %3004 = vmatpush.bf16.msrb.mxu0 %v4707_v52  ;;  %v4936_v62 = vld [vmem:[%s5852_s18] ss:$0 sm:$0xff]  ;;  %v4748_v52 = vld [vmem:[#allocation25 + $0x50] sm:$0xff] }
 0x4ab   : > { %2493 = vst [vmem:[#allocation4 + $0x8] sm:$0xf] %v2492_v0  ;;  %v4746_v56 = vld [vmem:[#allocation25 + $0x40] sm:$0xff] }
 0x4ac   : > { %2943 = vmatpush.bf16.msrb.mxu3 %v4715_v58 }
 0x4ae   : > { %3005 = vmatpush.bf16.msrb.mxu0 %v4706_v55  ;;  %v4754_v55 = vld [vmem:[#allocation25 + $0x80] sm:$0xff] }
 0x4b0   : > { %2944 = vmatpush.bf16.msrb.mxu3 %v4714_v60 }
 0x4b2   : > { %v2494_v6 = vld [vmem:[#allocation4 + $0x5] sm:$0xff] }
 0x4b3   : > { %v2496_v8 = vmax.f32 %v2494_v6, 0.0  ;;  %v2839_v1 = vld [vmem:[#allocation4 + $0x8] sm:$0xf] }
 0x4b5   : > { %v2498_v9 = vpack.c.bf16 %v2496_v8, %v2496_v8 }
 0x4b7   : > { %v2534_v11 = vunpack.c.l.b16 %v2498_v9  ;;  %2662 = vmatmul.bf16.vlgmr.msra.gmra.mxu0 %v2498_v9 }
 0x4b8   : > { %3338 = vmatpush.bf16.msra.mxu0 %v4745_v22 }
 0x4b9   : > { %v2535_v12 = vpack.c.b16 %v2534_v11, %v2534_v11  ;;  %v2686_v13 = vpack.c.b16 %v2685_v10, %v2534_v11 }
 0x4bb   : > { %v2687_v14 = vrot.slane %v2686_v13, 3  ;;  %v2537_v15 = vshrl.u32 %v2535_v12, 16  ;;  %v2540_v16 = vshll.u32 %v2535_v12, 16 }
 0x4bc   : > { %3339 = vmatpush.bf16.msra.mxu0 %v4744_v25 }
 0x4bd   : > { %2745 = vmatmul.bf16.vlgmr.msrb.gmra.mxu1 %v2687_v14  ;;  %v2539_v17 = vrot.slane %v2537_v15, 1  ;;  %v2542_v18 = vrot.slane %v2540_v16, 2  ;;  %v4736_v16 = vld [vmem:[#allocation24 + $0x30] sm:$0xff] }
 0x4be   : > { %3168 = vmatpush.bf16.msrb.mxu2 %v4736_v16  ;;  %3418 = vmatpush.bf16.msrb.mxu1 %v4761_v23  ;;  %v4939_v16 = vld [vmem:[#allocation27] ss:$0 sm:$0xff] }
 0x4bf   : > { %v2543_v19 = vor.u32 %v2542_v18, %v2539_v17  ;;  %v4735_v17 = vld [vmem:[#allocation24 + $0x28] sm:$0xff]  ;;  %v4734_v18 = vld [vmem:[#allocation24 + $0x20] sm:$0xff] }
 0x4c0   : > { %3340 = vmatpush.bf16.msra.mxu0 %v4743_v7 }
 0x4c1   : > { %2601 = vmatmul.bf16.vlgmr.msra.gmra.mxu3 %v2543_v19  ;;  %v4733_v19 = vld [vmem:[#allocation24 + $0x18] sm:$0xff] }
 0x4c2   : > { %3169 = vmatpush.bf16.msrb.mxu2 %v4735_v17  ;;  %3277 = vmatpush.bf16.msra.mxu3 %v4753_v24 }
 0x4c3   : > { %3419 = vmatpush.bf16.msrb.mxu1 %v4760_v26 }
 0x4c6   : > { %3170 = vmatpush.bf16.msrb.mxu2 %v4734_v18  ;;  %3278 = vmatpush.bf16.msra.mxu3 %v4752_v27 }
 0x4c7   : > { %3420 = vmatpush.bf16.msrb.mxu1 %v4759_v29 }
 0x4ca   : > { %3171 = vmatpush.bf16.msrb.mxu2 %v4733_v19 }
 0x4cb   : > { %3421 = vmatpush.bf16.msrb.mxu1 %v4758_v44 }
 0x4ce   : > { %3172 = vmatpush.bf16.msrb.mxu2 %v4732_v20 }
 0x4cf   : > { %3422 = vmatpush.bf16.msrb.mxu1 %v4757_v47 }
 0x4d2   : > { %3173 = vmatpush.bf16.msrb.mxu2 %v4731_v21 }
 0x4d3   : > { %3423 = vmatpush.bf16.msrb.mxu1 %v4756_v50 }
 0x4d6   : > { %3174 = vmatpush.bf16.msrb.mxu2 %v4730_v5 }
 0x4d7   : > { %3424 = vmatpush.bf16.msrb.mxu1 %v4755_v53 }
 0x4db   : > { %3425 = vmatpush.bf16.msrb.mxu1 %v4754_v55 }
 0x534   : > { %v2663_v30 = vpop.f32.mrf.mxu0 }
 0x53a   : > { %v2746_v33 = vpop.f32.mrf.mxu1 }
 0x53c   : > { %v2665_v34 = vpop.f32.mrf.mxu0 }
 0x542   : > { %v2748_v35 = vpop.f32.mrf.mxu1 }
 0x544   : > { %v2602_v36 = vpop.f32.mrf.mxu3 }
 0x545   : > { %v2664_v37 = vadd.f32 %v2663_v30, %v2602_v36  ;;  %v4742_v30 = vld [vmem:[#allocation25 + $0x20] sm:$0xff] }
 0x546   : > { %3341 = vmatpush.bf16.msra.mxu0 %v4742_v30  ;;  %v4937_v36 = vld [vmem:[%s5854_s20] ss:$0 sm:$0xff] }
 0x547   : > { %v2750_v39 = vadd.f32 %v2746_v33, %v2664_v37 }
 0x549   : > { %v2755_v40 = vadd.f32 %v4935_v38, %v2750_v39 }
 0x54b   : > { %v2756_v41 = vmax.f32 %v2755_v40, 0.0 }
 0x54c   : > { %v2604_v42 = vpop.f32.mrf.mxu3 }
 0x54d   : > { %v2757_v43 = vpack.c.bf16 %v2756_v41, %v2756_v41  ;;  %v4741_v42 = vld [vmem:[#allocation25 + $0x18] sm:$0xff] }
 0x54e   : > { %3342 = vmatpush.bf16.msra.mxu0 %v4741_v42 }
 0x54f   : > { %2834 = vmatmul.bf16.vlgmr.msra.gmra.mxu2 %v2757_v43  ;;  %v4751_v43 = vld [vmem:[#allocation25 + $0x68] sm:$0xff] }
 0x550   : > { %3279 = vmatpush.bf16.msra.mxu3 %v4751_v43 }
 0x552   : > { %3343 = vmatpush.bf16.msra.mxu0 %v4740_v45 }
 0x554   : > { %3280 = vmatpush.bf16.msra.mxu3 %v4750_v46 }
 0x556   : > { %3344 = vmatpush.bf16.msra.mxu0 %v4739_v48 }
 0x558   : > { %3281 = vmatpush.bf16.msra.mxu3 %v4749_v49 }
 0x55a   : > { %3345 = vmatpush.bf16.msra.mxu0 %v4738_v51 }
 0x55c   : > { %3282 = vmatpush.bf16.msra.mxu3 %v4748_v52 }
 0x560   : > { %3283 = vmatpush.bf16.msra.mxu3 %v4747_v54 }
 0x564   : > { %3284 = vmatpush.bf16.msra.mxu3 %v4746_v56 }
 0x5d2   : > { %v2835_v63 = vpop.f32.mrf.mxu2 }
 0x5d3   : > { %v2836_v0 = vadd.f32 %v4936_v62, %v2835_v63 }
 0x5d5   : > { %v2840_v2 = vadd.f32 %v2839_v1, %v2836_v0 }
 0x5d7   : > { %2841 = vst [vmem:[#allocation4 + $0x8] sm:$0xf] %v2840_v2 }
 0x5da   : > { %v2837_v3 = vpop.f32.mrf.mxu2 }
 0x5de   : > { %v2842_v4 = vld [vmem:[#allocation4 + $0x7] sm:$0x3f] }
 0x5df   : > { %v2843_v6 = vmax.f32 %v2842_v4, 0.0  ;;  %v3180_v60 = vld [vmem:[#allocation4 + $0x8] sm:$0xf] }
 0x5e1   : > { %v2844_v8 = vpack.c.bf16 %v2843_v6, %v2843_v6 }
 0x5e3   : > { %v2879_v9 = vunpack.c.l.b16 %v2844_v8  ;;  %3006 = vmatmul.bf16.vlgmr.msrb.gmra.mxu0 %v2844_v8 }
 0x5e5   : > { %v2880_v10 = vpack.c.b16 %v2879_v9, %v2879_v9 }
 0x5e7   : > { %v3028_v11 = vrot.slane %v2880_v10, 1  ;;  %v2884_v12 = vshll.u32 %v2880_v10, 16  ;;  %v2882_v13 = vshrl.u32 %v2880_v10, 16 }
 0x5e9   : > { %3086 = vmatmul.bf16.vlgmr.msra.gmra.mxu1 %v3028_v11  ;;  %v2886_v14 = vrot.slane %v2884_v12, 1 }
 0x5eb   : > { %v2887_v15 = vor.u32 %v2886_v14, %v2882_v13 }
 0x5ed   : > { %2945 = vmatmul.bf16.vlgmr.msrb.gmra.mxu3 %v2887_v15 }
 0x660   : > { %v3007_v28 = vpop.f32.mrf.mxu0 }
 0x666   : > { %v3087_v31 = vpop.f32.mrf.mxu1 }
 0x668   : > { %v3009_v32 = vpop.f32.mrf.mxu0 }
 0x66e   : > { %v3089_v33 = vpop.f32.mrf.mxu1 }
 0x670   : > { %v2946_v34 = vpop.f32.mrf.mxu3 }
 0x671   : > { %v3008_v35 = vadd.f32 %v3007_v28, %v2946_v34 }
 0x673   : > { %v3091_v37 = vadd.f32 %v3087_v31, %v3008_v35 }
 0x675   : > { %v3096_v38 = vadd.f32 %v4937_v36, %v3091_v37 }
 0x677   : > { %v3097_v39 = vmax.f32 %v3096_v38, 0.0 }
 0x678   : > { %v2948_v40 = vpop.f32.mrf.mxu3 }
 0x679   : > { %v3098_v41 = vpack.c.bf16 %v3097_v39, %v3097_v39 }
 0x67b   : > { %3175 = vmatmul.bf16.vlgmr.msrb.gmra.mxu2 %v3098_v41 }
 0x6fe   : > { %v3176_v58 = vpop.f32.mrf.mxu2 }
 0x6ff   : > { %v3177_v59 = vadd.f32 %v4938_v57, %v3176_v58 }
 0x701   : > { %v3181_v61 = vadd.f32 %v3180_v60, %v3177_v59 }
 0x703   : > { %3182 = vst [vmem:[#allocation4 + $0x8] sm:$0xf] %v3181_v61 }
 0x706   : > { %v3178_v62 = vpop.f32.mrf.mxu2 }
 0x70a   : > { %v3183_v63 = vld [vmem:[#allocation4 + $0x7] sm:$0x3f] }
 0x70b   : > { %v3184_v0 = vpack.c.bf16 %v3183_v63, %v3183_v63 }
 0x70d   : > { %v3219_v1 = vunpack.c.l.b16 %v3184_v0  ;;  %3346 = vmatmul.bf16.vlgmr.msra.gmra.mxu0 %v3184_v0 }
 0x70f   : > { %v3220_v2 = vpack.c.b16 %v3219_v1, %v3219_v1 }
 0x711   : > { %v3368_v3 = vrot.slane %v3220_v2, 1  ;;  %v3224_v4 = vshll.u32 %v3220_v2, 16  ;;  %v3222_v6 = vshrl.u32 %v3220_v2, 16 }
 0x713   : > { %3426 = vmatmul.bf16.vlgmr.msrb.gmra.mxu1 %v3368_v3  ;;  %v3226_v8 = vrot.slane %v3224_v4, 1 }
 0x715   : > { %v3227_v9 = vor.u32 %v3226_v8, %v3222_v6 }
 0x717   : > { %3285 = vmatmul.bf16.vlgmr.msra.gmra.mxu3 %v3227_v9 }
 0x78a   : > { %v3347_v10 = vpop.f32.mrf.mxu0 }
 0x790   : > { %v3427_v11 = vpop.f32.mrf.mxu1 }
 0x792   : > { %v3349_v12 = vpop.f32.mrf.mxu0 }
 0x798   : > { %v3429_v13 = vpop.f32.mrf.mxu1 }
 0x79a   : > { %v3286_v14 = vpop.f32.mrf.mxu3 }
 0x79b   : > { %v3348_v15 = vadd.f32 %v3347_v10, %v3286_v14 }
 0x79d   : > { %v3431_v17 = vadd.f32 %v3427_v11, %v3348_v15 }
 0x79f   : > { %v3436_v18 = vadd.f32 %v4939_v16, %v3431_v17 }
 0x7a1   : > { %3437 = vst [vmem:[%s1000_s26] sm:$0xf] %v3436_v18 }
 0x7a2   : > { %v3288_v19 = vpop.f32.mrf.mxu3 }
 0x7a3 PF: > { %s5897_s30 = sld [smem:[#allocation36_spill]] }
 0x7a9   : > { %s43_s29 = sadd.s32 1, %s5897_s30  }
 0x7aa   : > { %p40_p7 = scmp.ge.s32.totalorder %s43_s29, 4  }
 0x7ac   :  { %42 = sbr.rel (!%p40_p7) target bundleno = 25 (0x19), region = 225 }
 0x7b1   :  { %3457 = vsyncpa [#allocation6], 1 }
 0x7b2   :  { %3459 = vsyncpa [#allocation6 + $0x1], 1 }
 0x7b3   :  { %3460 = vsyncpa [#allocation8], 1 }
 0x7b4   :  { %3461 = vsyncpa [#allocation11], 1 }
 0x7b5   :  { %3462 = vsyncpa [#allocation14], 1 }
 0x7b6   :  { %3463 = vsyncpa [#allocation17], 1 }
 0x7b7   :  { %3464 = vsyncpa [#allocation20], 1 }
 0x7b8   :  { %3465 = vsyncpa [#allocation23], 1 }
 0x7b9   :  { %3466 = vsyncpa [#allocation26], 1 }

</bundles_post_ra>
